<compile_context>
chip_gen: v7x
topology: tpu7x:2x2x1
jax: 0.10.0
libtpu: 0.0.40
codegen_flags: <defaults>
</compile_context>

<pallas_src>
import functools

import jax
import jax.numpy as jnp
import numpy as np
from jax.experimental import pallas as pl
from jax.experimental.pallas import tpu as pltpu


def _round_up(n, m):
    return ((n + m - 1) // m) * m


def ae_kernel(x_ref,
              w1_ref, b1_ref,          # encoder Linear(out_sz, 256) + ReLU
              w2_ref, b2_ref,          # encoder Linear(256, 128)    + ReLU
              w34_ref, b34_ref,        # fused  Linear(128, hid) ∘ Linear(hid, 128) + ReLU
              w5_ref, b5_ref,          # decoder Linear(128, 256)    + ReLU
              w6_ref, b6_ref,          # decoder Linear(256, out)    + ReLU
              out_ref):
    mm = w1_ref.dtype  # matmul operand dtype (bf16 or f32); accumulate in f32

    # x_ref is already in the matmul operand dtype (host-side cast).
    a = jnp.dot(x_ref[...], w1_ref[...],
                preferred_element_type=jnp.float32) + b1_ref[...]
    a = jnp.maximum(a, 0.0)

    a = jnp.dot(a.astype(mm), w2_ref[...],
                preferred_element_type=jnp.float32) + b2_ref[...]
    a = jnp.maximum(a, 0.0)

    # Encoder layer 3 and decoder layer 1 have no activation between them in
    # the original module, so they are pre-fused into one 128x128 matmul.
    a = jnp.dot(a.astype(mm), w34_ref[...],
                preferred_element_type=jnp.float32) + b34_ref[...]
    a = jnp.maximum(a, 0.0)

    a = jnp.dot(a.astype(mm), w5_ref[...],
                preferred_element_type=jnp.float32) + b5_ref[...]
    a = jnp.maximum(a, 0.0)

    a = jnp.dot(a.astype(mm), w6_ref[...],
                preferred_element_type=jnp.float32) + b6_ref[...]
    a = jnp.maximum(a, 0.0)

    out_ref[...] = a.astype(out_ref.dtype)


def prepare_params(params, matmul_dtype=jnp.bfloat16):
    """One-time host-side parameter prep (do NOT call per forward).

    Fuses the activation-free 128 -> hidden -> 128 bottleneck
    (W34 = W3 @ W4, b34 = b3 @ W4 + b4 — mathematically identical to the
    original forward) and casts weight matrices to the matmul operand dtype.
    Returns 5 (W, b) pairs with W = [in, out] in matmul_dtype, b = [1, out] f32.
    """
    (w1, b1), (w2, b2), (w3, b3), (w4, b4), (w5, b5), (w6, b6) = params
    w3f, w4f = w3.astype(jnp.float32), w4.astype(jnp.float32)
    w34 = w3f @ w4f
    b34 = b3.astype(jnp.float32) @ w4f + b4.astype(jnp.float32)

    weights = [w1, w2, w34, w5, w6]
    biases = [b1, b2, b34, b5, b6]
    weights = [jnp.asarray(w, matmul_dtype) for w in weights]
    biases = [jnp.asarray(b, jnp.float32) for b in biases]
    return tuple(zip(weights, biases))


@functools.partial(jax.jit, static_argnames=("tile_b",))
def ae_forward(x, prepared_params, *, tile_b=2048):
    """x: [B, output_size]; prepared_params: output of prepare_params()."""
    B, in_features = x.shape
    (w1, b1), (w2, b2), (w34, b34), (w5, b5), (w6, b6) = prepared_params
    output_size = w6.shape[1]
    mm_dtype = w1.dtype

    # Matmul operands in mm_dtype (bf16 fast path on v5e/v6e/v7x); bias+ReLU f32.
    x = x.astype(mm_dtype)

    # Batch tile: multiple of 16 rows (bf16 (16,128) sublane tile), capped at
    # tile_b, and capped at ~B/2 so there are >= 2 grid steps whenever B >= 32
    # (v7x megacore sharding + DMA/compute overlap on v5e/v6e).
    row_align = 16
    half_b = _round_up(max((B + 1) // 2, 1), row_align)
    tile_eff = max(row_align, min(tile_b, half_b))
    grid = (pl.cdiv(B, tile_eff),)  # partial last block: Pallas pads reads / masks writes

    const_map = lambda i: (0, 0)   # weights/biases: one VMEM-resident copy for all steps
    in_specs = [pl.BlockSpec((tile_eff, in_features), lambda i: (i, 0))]
    flat_args = [x]
    for w, b in prepared_params:
        in_specs.append(pl.BlockSpec(w.shape, const_map))
        in_specs.append(pl.BlockSpec(b.shape, const_map))
        flat_args.append(w)
        flat_args.append(b)

    out = pl.pallas_call(
        ae_kernel,
        out_shape=jax.ShapeDtypeStruct((B, output_size), jnp.float32),
        grid=grid,
        in_specs=in_specs,
        # Last dim equals the full array dim (64) -> legal block, no column pad.
        out_specs=pl.BlockSpec((tile_eff, output_size), lambda i: (i, 0)),
        compiler_params=pltpu.CompilerParams(
            dimension_semantics=("parallel",),   # v7x: shard batch tiles over 2 TCs
        ),
    )(*flat_args)

    return out


def init_linear(key, in_features, out_features):
    """PyTorch nn.Linear default init: U(-1/sqrt(in), 1/sqrt(in)).
    Returns W as [in, out] (transposed for x @ W) and b as [1, out]."""
    kw, kb = jax.random.split(key)
    bound = 1.0 / np.sqrt(in_features)
    w = jax.random.uniform(kw, (in_features, out_features),
                           minval=-bound, maxval=bound, dtype=jnp.float32)
    b = jax.random.uniform(kb, (1, out_features),
                           minval=-bound, maxval=bound, dtype=jnp.float32)
    return w, b


def ae_reference(x, params):
    """Pure-JAX reference matching the PyTorch forward exactly."""
    (w1, b1), (w2, b2), (w3, b3), (w4, b4), (w5, b5), (w6, b6) = params
    h = jnp.maximum(x @ w1 + b1, 0.0)
    h = jnp.maximum(h @ w2 + b2, 0.0)
    h = h @ w3 + b3
    d = jnp.maximum(h @ w4 + b4, 0.0)
    d = jnp.maximum(d @ w5 + b5, 0.0)
    d = jnp.maximum(d @ w6 + b6, 0.0)
    return d


if __name__ == "__main__":
    hidden_size = 32
    output_size = 64

    key = jax.random.PRNGKey(0)
    keys = jax.random.split(key, 8)

    # encoder: output_size -> 256 -> 128 -> hidden_size
    # decoder: hidden_size -> 128 -> 256 -> output_size
    layer_dims = [
        (output_size, 256),
        (256, 128),
        (128, hidden_size),
        (hidden_size, 128),
        (128, 256),
        (256, output_size),
    ]
    params = [init_linear(keys[i], fi, fo) for i, (fi, fo) in enumerate(layer_dims)]

    # One-time parameter prep (bottleneck fusion + casts), outside the hot path.
    params_bf16 = prepare_params(params, jnp.bfloat16)   # default fast path
    params_f32 = prepare_params(params, jnp.float32)     # strict-accuracy path

    x_big = jax.random.normal(keys[6], (512, output_size), dtype=jnp.float32)
    x_small = jax.random.normal(keys[7], (7, output_size), dtype=jnp.float32)
    ref_big = ae_reference(x_big, params)
    ref_small = ae_reference(x_small, params)

    # 1) f32 operands, 2-step batch grid (2 x 256 rows) exercising megacore path
    out_big = jax.block_until_ready(ae_forward(x_big, params_f32))
    np.testing.assert_allclose(np.asarray(out_big), np.asarray(ref_big),
                               rtol=2e-4, atol=2e-4)

    # 2) f32 operands, ragged batch (7 rows -> one partial 16-row block, no host pad)
    out_small = jax.block_until_ready(ae_forward(x_small, params_f32))
    np.testing.assert_allclose(np.asarray(out_small), np.asarray(ref_small),
                               rtol=2e-4, atol=2e-4)

    # 3) bf16 operands / f32 accumulation (default fast path on v5e/v6e/v7x)
    out_bf16 = jax.block_until_ready(ae_forward(x_big, params_bf16))
    np.testing.assert_allclose(np.asarray(out_bf16), np.asarray(ref_big),
                               rtol=5e-2, atol=5e-2)

    print("KERNEL_OK")
</pallas_src>

<mosaic_0001>
module attributes {stable_mosaic.version = 11 : i64} {
  func.func @ae_kernel(%arg0: i32, %arg1: memref<256x64xf32, #tpu.memory_space<vmem>>, %arg2: memref<64x256xf32, #tpu.memory_space<vmem>>, %arg3: memref<1x256xf32, #tpu.memory_space<vmem>>, %arg4: memref<256x128xf32, #tpu.memory_space<vmem>>, %arg5: memref<1x128xf32, #tpu.memory_space<vmem>>, %arg6: memref<128x128xf32, #tpu.memory_space<vmem>>, %arg7: memref<1x128xf32, #tpu.memory_space<vmem>>, %arg8: memref<128x256xf32, #tpu.memory_space<vmem>>, %arg9: memref<1x256xf32, #tpu.memory_space<vmem>>, %arg10: memref<256x64xf32, #tpu.memory_space<vmem>>, %arg11: memref<1x64xf32, #tpu.memory_space<vmem>>, %arg12: memref<256x64xf32, #tpu.memory_space<vmem>>) attributes {dimension_semantics = [#tpu.dimension_semantics<parallel>], iteration_bounds = array<i64: 2>, scalar_prefetch = 0 : i64, scratch_operands = 0 : i64, tpu.core_type = #tpu.core_type<tc>, window_params = [{transform_indices = @transform_0, window_bounds = array<i64: 256, 64>}, {pipeline_mode = #tpu.pipeline_mode<synchronous>, transform_indices = @transform_1, window_bounds = array<i64: 64, 256>}, {pipeline_mode = #tpu.pipeline_mode<synchronous>, transform_indices = @transform_2, window_bounds = array<i64: 1, 256>}, {pipeline_mode = #tpu.pipeline_mode<synchronous>, transform_indices = @transform_3, window_bounds = array<i64: 256, 128>}, {pipeline_mode = #tpu.pipeline_mode<synchronous>, transform_indices = @transform_4, window_bounds = array<i64: 1, 128>}, {pipeline_mode = #tpu.pipeline_mode<synchronous>, transform_indices = @transform_5, window_bounds = array<i64: 128, 128>}, {pipeline_mode = #tpu.pipeline_mode<synchronous>, transform_indices = @transform_6, window_bounds = array<i64: 1, 128>}, {pipeline_mode = #tpu.pipeline_mode<synchronous>, transform_indices = @transform_7, window_bounds = array<i64: 128, 256>}, {pipeline_mode = #tpu.pipeline_mode<synchronous>, transform_indices = @transform_8, window_bounds = array<i64: 1, 256>}, {pipeline_mode = #tpu.pipeline_mode<synchronous>, transform_indices = @transform_9, window_bounds = array<i64: 256, 64>}, {pipeline_mode = #tpu.pipeline_mode<synchronous>, transform_indices = @transform_10, window_bounds = array<i64: 1, 64>}, {transform_indices = @transform_11, window_bounds = array<i64: 256, 64>}]} {
    %c0 = arith.constant 0 : index
    %c0_0 = arith.constant 0 : index
    %0 = vector.load %arg1[%c0, %c0_0] : memref<256x64xf32, #tpu.memory_space<vmem>>, vector<256x64xf32>
    %c0_1 = arith.constant 0 : index
    %c0_2 = arith.constant 0 : index
    %1 = vector.load %arg2[%c0_1, %c0_2] : memref<64x256xf32, #tpu.memory_space<vmem>>, vector<64x256xf32>
    %cst = arith.constant dense<0.000000e+00> : vector<256x256xf32>
    %2 = tpu.matmul %0, %1, %cst {dimension_numbers = #tpu.dot_dimension_numbers<[1], [0], [0], [1], [0, 0, 1, 1], [], []>} : vector<256x64xf32>, vector<64x256xf32>, vector<256x256xf32> -> vector<256x256xf32>
    %c0_3 = arith.constant 0 : index
    %c0_4 = arith.constant 0 : index
    %3 = vector.load %arg3[%c0_3, %c0_4] : memref<1x256xf32, #tpu.memory_space<vmem>>, vector<1x256xf32>
    %4 = vector.broadcast %3 : vector<1x256xf32> to vector<256x256xf32>
    %5 = arith.addf %2, %4 : vector<256x256xf32>
    %cst_5 = arith.constant 0.000000e+00 : f32
    %6 = vector.broadcast %cst_5 : f32 to vector<256x256xf32>
    %7 = arith.maximumf %5, %6 : vector<256x256xf32>
    %c0_6 = arith.constant 0 : index
    %c0_7 = arith.constant 0 : index
    %8 = vector.load %arg4[%c0_6, %c0_7] : memref<256x128xf32, #tpu.memory_space<vmem>>, vector<256x128xf32>
    %cst_8 = arith.constant dense<0.000000e+00> : vector<256x128xf32>
    %9 = tpu.matmul %7, %8, %cst_8 {dimension_numbers = #tpu.dot_dimension_numbers<[1], [0], [0], [1], [0, 0, 1, 1], [], []>} : vector<256x256xf32>, vector<256x128xf32>, vector<256x128xf32> -> vector<256x128xf32>
    %c0_9 = arith.constant 0 : index
    %c0_10 = arith.constant 0 : index
    %10 = vector.load %arg5[%c0_9, %c0_10] : memref<1x128xf32, #tpu.memory_space<vmem>>, vector<1x128xf32>
    %11 = vector.broadcast %10 : vector<1x128xf32> to vector<256x128xf32>
    %12 = arith.addf %9, %11 : vector<256x128xf32>
    %cst_11 = arith.constant 0.000000e+00 : f32
    %13 = vector.broadcast %cst_11 : f32 to vector<256x128xf32>
    %14 = arith.maximumf %12, %13 : vector<256x128xf32>
    %c0_12 = arith.constant 0 : index
    %c0_13 = arith.constant 0 : index
    %15 = vector.load %arg6[%c0_12, %c0_13] : memref<128x128xf32, #tpu.memory_space<vmem>>, vector<128x128xf32>
    %cst_14 = arith.constant dense<0.000000e+00> : vector<256x128xf32>
    %16 = tpu.matmul %14, %15, %cst_14 {dimension_numbers = #tpu.dot_dimension_numbers<[1], [0], [0], [1], [0, 0, 1, 1], [], []>} : vector<256x128xf32>, vector<128x128xf32>, vector<256x128xf32> -> vector<256x128xf32>
    %c0_15 = arith.constant 0 : index
    %c0_16 = arith.constant 0 : index
    %17 = vector.load %arg7[%c0_15, %c0_16] : memref<1x128xf32, #tpu.memory_space<vmem>>, vector<1x128xf32>
    %18 = vector.broadcast %17 : vector<1x128xf32> to vector<256x128xf32>
    %19 = arith.addf %16, %18 : vector<256x128xf32>
    %cst_17 = arith.constant 0.000000e+00 : f32
    %20 = vector.broadcast %cst_17 : f32 to vector<256x128xf32>
    %21 = arith.maximumf %19, %20 : vector<256x128xf32>
    %c0_18 = arith.constant 0 : index
    %c0_19 = arith.constant 0 : index
    %22 = vector.load %arg8[%c0_18, %c0_19] : memref<128x256xf32, #tpu.memory_space<vmem>>, vector<128x256xf32>
    %cst_20 = arith.constant dense<0.000000e+00> : vector<256x256xf32>
    %23 = tpu.matmul %21, %22, %cst_20 {dimension_numbers = #tpu.dot_dimension_numbers<[1], [0], [0], [1], [0, 0, 1, 1], [], []>} : vector<256x128xf32>, vector<128x256xf32>, vector<256x256xf32> -> vector<256x256xf32>
    %c0_21 = arith.constant 0 : index
    %c0_22 = arith.constant 0 : index
    %24 = vector.load %arg9[%c0_21, %c0_22] : memref<1x256xf32, #tpu.memory_space<vmem>>, vector<1x256xf32>
    %25 = vector.broadcast %24 : vector<1x256xf32> to vector<256x256xf32>
    %26 = arith.addf %23, %25 : vector<256x256xf32>
    %cst_23 = arith.constant 0.000000e+00 : f32
    %27 = vector.broadcast %cst_23 : f32 to vector<256x256xf32>
    %28 = arith.maximumf %26, %27 : vector<256x256xf32>
    %c0_24 = arith.constant 0 : index
    %c0_25 = arith.constant 0 : index
    %29 = vector.load %arg10[%c0_24, %c0_25] : memref<256x64xf32, #tpu.memory_space<vmem>>, vector<256x64xf32>
    %cst_26 = arith.constant dense<0.000000e+00> : vector<256x64xf32>
    %30 = tpu.matmul %28, %29, %cst_26 {dimension_numbers = #tpu.dot_dimension_numbers<[1], [0], [0], [1], [0, 0, 1, 1], [], []>} : vector<256x256xf32>, vector<256x64xf32>, vector<256x64xf32> -> vector<256x64xf32>
    %c0_27 = arith.constant 0 : index
    %c0_28 = arith.constant 0 : index
    %31 = vector.load %arg11[%c0_27, %c0_28] : memref<1x64xf32, #tpu.memory_space<vmem>>, vector<1x64xf32>
    %32 = vector.broadcast %31 : vector<1x64xf32> to vector<256x64xf32>
    %33 = arith.addf %30, %32 : vector<256x64xf32>
    %cst_29 = arith.constant 0.000000e+00 : f32
    %34 = vector.broadcast %cst_29 : f32 to vector<256x64xf32>
    %35 = arith.maximumf %33, %34 : vector<256x64xf32>
    %c0_30 = arith.constant 0 : index
    %c0_31 = arith.constant 0 : index
    %36 = vector.load %arg12[%c0_30, %c0_31] : memref<256x64xf32, #tpu.memory_space<vmem>>, vector<256x64xf32>
    tpu.vector_store %arg12[%c0_30, %c0_31], %35 {strides = array<i32>} : memref<256x64xf32, #tpu.memory_space<vmem>>, vector<256x64xf32>,
    return
  }
  func.func @transform_0(%arg0: i32) -> (i32, i32) {
    %c0_i32 = arith.constant 0 : i32
    %c0_i32_0 = arith.constant 0 : i32
    return %arg0, %c0_i32 : i32, i32
  }
  func.func @transform_1(%arg0: i32) -> (i32, i32) {
    %c0_i32 = arith.constant 0 : i32
    %c0_i32_0 = arith.constant 0 : i32
    %c0_i32_1 = arith.constant 0 : i32
    return %c0_i32, %c0_i32_0 : i32, i32
  }
  func.func @transform_2(%arg0: i32) -> (i32, i32) {
    %c0_i32 = arith.constant 0 : i32
    %c0_i32_0 = arith.constant 0 : i32
    %c0_i32_1 = arith.constant 0 : i32
    return %c0_i32, %c0_i32_0 : i32, i32
  }
  func.func @transform_3(%arg0: i32) -> (i32, i32) {
    %c0_i32 = arith.constant 0 : i32
    %c0_i32_0 = arith.constant 0 : i32
    %c0_i32_1 = arith.constant 0 : i32
    return %c0_i32, %c0_i32_0 : i32, i32
  }
  func.func @transform_4(%arg0: i32) -> (i32, i32) {
    %c0_i32 = arith.constant 0 : i32
    %c0_i32_0 = arith.constant 0 : i32
    %c0_i32_1 = arith.constant 0 : i32
    return %c0_i32, %c0_i32_0 : i32, i32
  }
  func.func @transform_5(%arg0: i32) -> (i32, i32) {
    %c0_i32 = arith.constant 0 : i32
    %c0_i32_0 = arith.constant 0 : i32
    %c0_i32_1 = arith.constant 0 : i32
    return %c0_i32, %c0_i32_0 : i32, i32
  }
  func.func @transform_6(%arg0: i32) -> (i32, i32) {
    %c0_i32 = arith.constant 0 : i32
    %c0_i32_0 = arith.constant 0 : i32
    %c0_i32_1 = arith.constant 0 : i32
    return %c0_i32, %c0_i32_0 : i32, i32
  }
  func.func @transform_7(%arg0: i32) -> (i32, i32) {
    %c0_i32 = arith.constant 0 : i32
    %c0_i32_0 = arith.constant 0 : i32
    %c0_i32_1 = arith.constant 0 : i32
    return %c0_i32, %c0_i32_0 : i32, i32
  }
  func.func @transform_8(%arg0: i32) -> (i32, i32) {
    %c0_i32 = arith.constant 0 : i32
    %c0_i32_0 = arith.constant 0 : i32
    %c0_i32_1 = arith.constant 0 : i32
    return %c0_i32, %c0_i32_0 : i32, i32
  }
  func.func @transform_9(%arg0: i32) -> (i32, i32) {
    %c0_i32 = arith.constant 0 : i32
    %c0_i32_0 = arith.constant 0 : i32
    %c0_i32_1 = arith.constant 0 : i32
    return %c0_i32, %c0_i32_0 : i32, i32
  }
  func.func @transform_10(%arg0: i32) -> (i32, i32) {
    %c0_i32 = arith.constant 0 : i32
    %c0_i32_0 = arith.constant 0 : i32
    %c0_i32_1 = arith.constant 0 : i32
    return %c0_i32, %c0_i32_0 : i32, i32
  }
  func.func @transform_11(%arg0: i32) -> (i32, i32) {
    %c0_i32 = arith.constant 0 : i32
    %c0_i32_0 = arith.constant 0 : i32
    return %arg0, %c0_i32 : i32, i32
  }
}

</mosaic_0001>

<bundles_post_ra>
// kernel: ae_forward.1
= control target key start
LH: loop header
LB: loop body
LE: loop exit
PB: predicated region body
PF: predicated region fallthrough
CT: control target
= control target key end

     0   :  { %s2655_s17 = smov 0   ;;  %s3572_s0 = inlined_call_operand.vmem [shape: f32[512,64], index: 0, kind: input, shape index: {}]   ;;  %s3573_s1 = inlined_call_operand.vmem [shape: f32[64,256], index: 1, kind: input, shape index: {}]   ;;  %s3574_s2 = inlined_call_operand.vmem [shape: f32[1,256], index: 2, kind: input, shape index: {}]   ;;  %s3575_s3 = inlined_call_operand.vmem [shape: f32[256,128], index: 3, kind: input, shape index: {}]   ;;  %s3576_s4 = inlined_call_operand.vmem [shape: f32[1,128], index: 4, kind: input, shape index: {}]   ;;  %s3577_s5 = inlined_call_operand.vmem [shape: f32[128,128], index: 5, kind: input, shape index: {}]   ;;  %s3578_s6 = inlined_call_operand.vmem [shape: f32[1,128], index: 6, kind: input, shape index: {}]   ;;  %s3579_s7 = inlined_call_operand.vmem [shape: f32[128,256], index: 7, kind: input, shape index: {}]   ;;  %s3580_s8 = inlined_call_operand.vmem [shape: f32[1,256], index: 8, kind: input, shape index: {}]   ;;  %s3581_s9 = inlined_call_operand.vmem [shape: f32[256,64], index: 9, kind: input, shape index: {}]   ;;  %s3582_s10 = inlined_call_operand.vmem [shape: f32[1,64], index: 10, kind: input, shape index: {}]   ;;  %s3583_s11 = inlined_call_operand.vmem [shape: f32[512,64], index: 11, kind: output, shape index: {}]  }
   0x1 LB: > { %s2193_s18 = sadd.s32 4294967295, %s2591_s17   ;;  %p2197_p0 = scmp.ge.s32.totalorder %s2591_s17, 1  ;;  %s2591_s17 = sphi %s2655_s17, %s21_s17  }
   0x2   : > { %p338_p1 = scmp.lt.s32.totalorder %s2591_s17, 3 }
   0x4   : > { %p339_p2 = pnand %p2197_p0, %p338_p1 }
   0x5   : > { %v423_v0 = vld [vmem:[%s3573_s1 + $0x8] sm:$0xff] (!%p339_p2)  ;;  %v425_v1 = vld [vmem:[%s3573_s1 + $0x18] sm:$0xff] (!%p339_p2)  ;;  %v422_v2 = vld [vmem:[%s3573_s1] sm:$0xff] (!%p339_p2)  ;;  %s2198_s25 = sshll.u32 (!%p339_p2), %s2193_s18, 5  ;;  %v2593_v7 = vmov (!%p339_p2), 0.0   ;;  %vm450_vm0 = vcmask (!%p339_p2), 523264  }
   0x6   : > { %342 = sbr.rel (%p339_p2) target bundleno = 1238 (0x4d6), region = 64  ;;  %v2367_v3 = vpack.c.bf16 (!%p339_p2), %v425_v1, %v423_v0  ;;  %v424_v4 = vld [vmem:[%s3573_s1 + $0x10] sm:$0xff] (!%p339_p2)  ;;  %v427_v5 = vld [vmem:[%s3573_s1 + $0x28] sm:$0xff] (!%p339_p2)  ;;  %v429_v6 = vld [vmem:[%s3573_s1 + $0x38] sm:$0xff] (!%p339_p2)  ;;  %611 = vmatprep.mubr.f32.mxu0 (!%p339_p2), %v2593_v7  ;;  %p379_p3 = scmp.lt.s32.totalorder (!%p339_p2), %s2198_s25, 63  ;;  %v2594_v26 = vmov (!%p339_p2), 0.0|0.0  }
   0x7   : > { %v2369_v8 = vpack.c.bf16 (!%p339_p2), %v424_v4, %v422_v2  ;;  %v2371_v9 = vpack.c.bf16 (!%p339_p2), %v429_v6, %v427_v5  ;;  %v426_v10 = vld [vmem:[%s3573_s1 + $0x20] sm:$0xff] (!%p339_p2)  ;;  %v428_v11 = vld [vmem:[%s3573_s1 + $0x30] sm:$0xff] (!%p339_p2)  ;;  %v431_v12 = vld [vmem:[%s3573_s1 + $0x48] sm:$0xff] (!%p339_p2)  ;;  %2383 = vmatprep.subr.bf16.mxu1 (!%p339_p2), %v2594_v26 }
   0x8   : > { %2368 = vmatprep.subr.bf16.mxu0 (!%p339_p2), %v2367_v3  ;;  %v433_v13 = vld [vmem:[%s3573_s1 + $0x58] sm:$0xff] (!%p339_p2)  ;;  %v2373_v14 = vpack.c.bf16 (!%p339_p2), %v428_v11, %v426_v10  ;;  %v430_v16 = vld [vmem:[%s3573_s1 + $0x40] sm:$0xff] (!%p339_p2)  ;;  %v432_v17 = vld [vmem:[%s3573_s1 + $0x50] sm:$0xff] (!%p339_p2) }
   0x9   : > { %2370 = vmatpush1.bf16.msra.mxu0 (!%p339_p2), %v2369_v8  ;;  %v2375_v15 = vpack.c.bf16 (!%p339_p2), %v433_v13, %v431_v12  ;;  %v435_v18 = vld [vmem:[%s3573_s1 + $0x68] sm:$0xff] (!%p339_p2)  ;;  %v437_v19 = vld [vmem:[%s3573_s1 + $0x78] sm:$0xff] (!%p339_p2)  ;;  %v2377_v20 = vpack.c.bf16 (!%p339_p2), %v432_v17, %v430_v16  ;;  %v434_v22 = vld [vmem:[%s3573_s1 + $0x60] sm:$0xff] (!%p339_p2) }
   0xa   : > { %2372 = vmatprep.subr.bf16.mxu0 (!%p339_p2), %v2371_v9  ;;  %v2379_v21 = vpack.c.bf16 (!%p339_p2), %v437_v19, %v435_v18  ;;  %v436_v23 = vld [vmem:[%s3573_s1 + $0x70] sm:$0xff] (!%p339_p2)  ;;  %v868_v27 = vld [vmem:[%s3575_s3] sm:$0xff] (!%p339_p2)  ;;  %v869_v28 = vld [vmem:[%s3575_s3 + $0x8] sm:$0xff] (!%p339_p2) }
   0xb   : > { %v2381_v24 = vpack.c.bf16 (!%p339_p2), %v436_v23, %v434_v22  ;;  %v870_v29 = vld [vmem:[%s3575_s3 + $0x10] sm:$0xff] (!%p339_p2)  ;;  %v871_v30 = vld [vmem:[%s3575_s3 + $0x18] sm:$0xff] (!%p339_p2)  ;;  %v2384_v31 = vpack.c.bf16 (!%p339_p2), %v869_v28, %v868_v27  ;;  %v872_v34 = vld [vmem:[%s3575_s3 + $0x20] sm:$0xff] (!%p339_p2) }
   0xc   : > { %v2387_v33 = vpack.c.bf16 (!%p339_p2), %v871_v30, %v870_v29  ;;  %v873_v35 = vld [vmem:[%s3575_s3 + $0x28] sm:$0xff] (!%p339_p2)  ;;  %v874_v38 = vld [vmem:[%s3575_s3 + $0x30] sm:$0xff] (!%p339_p2)  ;;  %v875_v39 = vld [vmem:[%s3575_s3 + $0x38] sm:$0xff] (!%p339_p2) }
   0xd   : > { %s3585_s25 = smov (!%p379_p3, %s2198_s25), 63  ;;  %2374 = vmatpush1.bf16.msra.mxu0 %v2373_v14  ;;  %2385 = vmatpush1.bf16.msra.mxu1 %v2384_v31  ;;  %v2390_v37 = vpack.c.bf16 %v873_v35, %v872_v34  ;;  %v2393_v41 = vpack.c.bf16 %v875_v39, %v874_v38  ;;  %v876_v42 = vld [vmem:[%s3575_s3 + $0x40] sm:$0xff]  ;;  %v877_v43 = vld [vmem:[%s3575_s3 + $0x48] sm:$0xff]  ;;  %v878_v46 = vld [vmem:[%s3575_s3 + $0x50] sm:$0xff] }
   0xe   : > { %2376 = vmatprep.subr.bf16.mxu0 %v2375_v15  ;;  %s2199_s16 = sshll.u32 %s3585_s25, 3  ;;  %2386 = vmatprep.subr.bf16.mxu1 %v2594_v26  ;;  %v2396_v45 = vpack.c.bf16 %v877_v43, %v876_v42  ;;  %v879_v47 = vld [vmem:[%s3575_s3 + $0x58] sm:$0xff]  ;;  %v880_v50 = vld [vmem:[%s3575_s3 + $0x60] sm:$0xff]  ;;  %v881_v51 = vld [vmem:[%s3575_s3 + $0x68] sm:$0xff] }
   0xf   : > { %s2720_s20 = scalar_lea.vmem %s3572_s0, %s2199_s16  ;;  %v2399_v49 = vpack.c.bf16 %v879_v47, %v878_v46  ;;  %v2402_v53 = vpack.c.bf16 %v881_v51, %v880_v50  ;;  %v882_v54 = vld [vmem:[%s3575_s3 + $0x70] sm:$0xff]  ;;  %v883_v55 = vld [vmem:[%s3575_s3 + $0x78] sm:$0xff]  ;;  %v884_v58 = vld [vmem:[%s3575_s3 + $0x80] sm:$0xff]  ;;  %v440_v47 = vlaneseq  ;;  %s3472_s21 = scalar_lea.vmem %s3583_s11, %s2199_s16 }
  0x10   : > { %v390_v25 = vld [vmem:[%s2720_s20] sm:$0xff]  ;;  %v391_v32 = vld [vmem:[%s2720_s20 + $0x8] sm:$0xff]  ;;  %v392_v36 = vld [vmem:[%s2720_s20 + $0x10] sm:$0xff]  ;;  %v2405_v57 = vpack.c.bf16 %v883_v55, %v882_v54 }
  0x11   : > { %2378 = vmatpush1.bf16.msra.mxu0 %v2377_v20  ;;  %2388 = vmatpush1.bf16.msra.mxu1 %v2387_v33  ;;  %v393_v40 = vld [vmem:[%s2720_s20 + $0x18] sm:$0xff]  ;;  %v394_v44 = vld [vmem:[%s2720_s20 + $0x20] sm:$0xff]  ;;  %v395_v48 = vld [vmem:[%s2720_s20 + $0x28] sm:$0xff]  ;;  %v2941_v50 = vshrl.u32 %v440_v47, 7 }
  0x12   : > { %2380 = vmatprep.subr.bf16.mxu0 %v2379_v21  ;;  %2389 = vmatprep.subr.bf16.mxu1 %v2594_v26  ;;  %v396_v52 = vld [vmem:[%s2720_s20 + $0x30] sm:$0xff]  ;;  %v397_v56 = vld [vmem:[%s2720_s20 + $0x38] sm:$0xff]  ;;  %v885_v59 = vld [vmem:[%s3575_s3 + $0x88] sm:$0xff] }
  0x13   : > { %v398_v60 = vld [vmem:[%s2720_s20 + $0x40] sm:$0xff]  ;;  %v2408_v61 = vpack.c.bf16 %v885_v59, %v884_v58  ;;  %v886_v62 = vld [vmem:[%s3575_s3 + $0x90] sm:$0xff]  ;;  %v887_v63 = vld [vmem:[%s3575_s3 + $0x98] sm:$0xff]  ;;  %v446_v54 = vsub.s32 1, %v2941_v50 }
  0x14   : > { %v399_v0 = vld [vmem:[%s2720_s20 + $0x48] sm:$0xff]  ;;  %v2411_v1 = vpack.c.bf16 %v887_v63, %v886_v62  ;;  %v888_v2 = vld [vmem:[%s3575_s3 + $0xa0] sm:$0xff]  ;;  %v400_v4 = vld [vmem:[%s2720_s20 + $0x50] sm:$0xff] }
  0x15   : > { %2382 = vmatpush1.bf16.msra.mxu0 %v2381_v24  ;;  %2391 = vmatpush1.bf16.msra.mxu1 %v2390_v37  ;;  %v889_v3 = vld [vmem:[%s3575_s3 + $0xa8] sm:$0xff]  ;;  %v890_v6 = vld [vmem:[%s3575_s3 + $0xb0] sm:$0xff]  ;;  %v891_v8 = vld [vmem:[%s3575_s3 + $0xb8] sm:$0xff] }
  0x16   : > { %2392 = vmatprep.subr.bf16.mxu1 %v2594_v26  ;;  %v2414_v5 = vpack.c.bf16 %v889_v3, %v888_v2  ;;  %v401_v9 = vld [vmem:[%s2720_s20 + $0x58] sm:$0xff]  ;;  %v2417_v10 = vpack.c.bf16 %v891_v8, %v890_v6  ;;  %v892_v11 = vld [vmem:[%s3575_s3 + $0xc0] sm:$0xff]  ;;  %v893_v12 = vld [vmem:[%s3575_s3 + $0xc8] sm:$0xff] }
  0x17   : > { %v402_v13 = vld [vmem:[%s2720_s20 + $0x60] sm:$0xff]  ;;  %v2420_v14 = vpack.c.bf16 %v893_v12, %v892_v11  ;;  %v894_v15 = vld [vmem:[%s3575_s3 + $0xd0] sm:$0xff]  ;;  %v895_v16 = vld [vmem:[%s3575_s3 + $0xd8] sm:$0xff] }
  0x18   : > { %2202 = vmatmul.mubr.msk.f32.vlgmr.msra.gmra.mrb[0].mxu0 %vm450_vm0, %v390_v25  ;;  %v403_v17 = vld [vmem:[%s2720_s20 + $0x68] sm:$0xff]  ;;  %v2423_v18 = vpack.c.bf16 %v895_v16, %v894_v15  ;;  %v404_v19 = vld [vmem:[%s2720_s20 + $0x70] sm:$0xff]  ;;  %v405_v20 = vld [vmem:[%s2720_s20 + $0x78] sm:$0xff] }
  0x19   : > { %617 = vmatprep.mubr.f32.mxu0 %v2593_v7  ;;  %2394 = vmatpush1.bf16.msra.mxu1 %v2393_v41  ;;  %v406_v21 = vld [vmem:[%s2720_s20 + $0x80] sm:$0xff]  ;;  %v407_v22 = vld [vmem:[%s2720_s20 + $0x88] sm:$0xff]  ;;  %v408_v23 = vld [vmem:[%s2720_s20 + $0x90] sm:$0xff] }
  0x1a   : > { %2395 = vmatprep.subr.bf16.mxu1 %v2594_v26  ;;  %v409_v24 = vld [vmem:[%s2720_s20 + $0x98] sm:$0xff]  ;;  %v410_v25 = vld [vmem:[%s2720_s20 + $0xa0] sm:$0xff]  ;;  %v897_v28 = vld [vmem:[%s3575_s3 + $0xe8] sm:$0xff] }
  0x1b   : > { %v896_v27 = vld [vmem:[%s3575_s3 + $0xe0] sm:$0xff]  ;;  %v411_v29 = vld [vmem:[%s2720_s20 + $0xa8] sm:$0xff]  ;;  %v898_v31 = vld [vmem:[%s3575_s3 + $0xf0] sm:$0xff] }
  0x1c   : > { %2203 = vmatmul.mubr.msk.f32.gmra.mrb[2].mxu0 %vm450_vm0, %v391_v32  ;;  %v2426_v30 = vpack.c.bf16 %v897_v28, %v896_v27  ;;  %v899_v32 = vld [vmem:[%s3575_s3 + $0xf8] sm:$0xff]  ;;  %v412_v33 = vld [vmem:[%s2720_s20 + $0xb0] sm:$0xff]  ;;  %v415_v37 = vld [vmem:[%s2720_s20 + $0xc8] sm:$0xff] }
  0x1d   : > { %623 = vmatprep.mubr.f32.mxu0 %v2593_v7  ;;  %2397 = vmatpush1.bf16.msra.mxu1 %v2396_v45  ;;  %v2429_v34 = vpack.c.bf16 %v899_v32, %v898_v31  ;;  %v413_v35 = vld [vmem:[%s2720_s20 + $0xb8] sm:$0xff]  ;;  %v416_v38 = vld [vmem:[%s2720_s20 + $0xd0] sm:$0xff]  ;;  %v419_v41 = vld [vmem:[%s2720_s20 + $0xe8] sm:$0xff] }
  0x1e   : > { %2398 = vmatprep.subr.bf16.mxu1 %v2594_v26  ;;  %v417_v39 = vld [vmem:[%s2720_s20 + $0xd8] sm:$0xff]  ;;  %v420_v42 = vld [vmem:[%s2720_s20 + $0xf0] sm:$0xff]  ;;  %v1165_v45 = vld [vmem:[%s3577_s5 + $0x8] sm:$0xff] }
  0x1f   : > { %v421_v43 = vld [vmem:[%s2720_s20 + $0xf8] sm:$0xff]  ;;  %v1169_v62 = vld [vmem:[%s3577_s5 + $0x28] sm:$0xff]  ;;  %v1174_v15 = vld [vmem:[%s3577_s5 + $0x50] sm:$0xff] }
  0x20   : > { %2204 = vmatmul.mubr.msk.f32.gmra.mrb[4].mxu0 %vm450_vm0, %v392_v36  ;;  %v414_v36 = vld [vmem:[%s2720_s20 + $0xc0] sm:$0xff]  ;;  %v1173_v6 = vld [vmem:[%s3577_s5 + $0x48] sm:$0xff]  ;;  %v1175_v16 = vld [vmem:[%s3577_s5 + $0x58] sm:$0xff] }
  0x21   : > { %629 = vmatprep.mubr.f32.mxu0 %v2593_v7  ;;  %2400 = vmatpush1.bf16.msra.mxu1 %v2399_v49  ;;  %v1167_v49 = vld [vmem:[%s3577_s5 + $0x18] sm:$0xff] }
  0x22   : > { %2401 = vmatprep.subr.bf16.mxu1 %v2594_v26 }
  0x24   : > { %2205 = vmatmul.mubr.msk.f32.gmra.mrb[6].mxu0 %vm450_vm0, %v393_v40  ;;  %v418_v40 = vld [vmem:[%s2720_s20 + $0xe0] sm:$0xff] }
  0x25   : > { %635 = vmatprep.mubr.f32.mxu0 %v2593_v7  ;;  %2403 = vmatpush1.bf16.msra.mxu1 %v2402_v53  ;;  %v438_v53 = vld [vmem:[%s3574_s2] sm:$0x3] }
  0x26   : > { %2404 = vmatprep.subr.bf16.mxu1 %v2594_v26 }
  0x28   : > { %2206 = vmatmul.mubr.msk.f32.gmra.mrb[8].mxu0 %vm450_vm0, %v394_v44  ;;  %v1164_v44 = vld [vmem:[%s3577_s5] sm:$0xff] }
  0x29   : > { %641 = vmatprep.mubr.f32.mxu0 %v2593_v7  ;;  %2406 = vmatpush1.bf16.msra.mxu1 %v2405_v57  ;;  %v2431_v46 = vpack.c.bf16 %v1165_v45, %v1164_v44 }
  0x2a   : > { %2407 = vmatprep.subr.bf16.mxu1 %v2594_v26 }
  0x2b   : > { %2432 = vmatprep.subr.bf16.mxu0 %v2431_v46 }
  0x2c   : > { %2207 = vmatmul.mubr.msk.f32.gmra.mrb[10].mxu0 %vm450_vm0, %v395_v48  ;;  %v1166_v48 = vld [vmem:[%s3577_s5 + $0x10] sm:$0xff] }
  0x2d   : > { %647 = vmatprep.mubr.f32.mxu0 %v2593_v7  ;;  %2409 = vmatpush1.bf16.msra.mxu1 %v2408_v61  ;;  %v2435_v51 = vpack.c.bf16 %v1167_v49, %v1166_v48  ;;  %v1168_v61 = vld [vmem:[%s3577_s5 + $0x20] sm:$0xff] }
  0x2e   : > { %2410 = vmatprep.subr.bf16.mxu1 %v2594_v26  ;;  %2434 = vmatpush3.bf16.msra.mxu0 %v2431_v46  ;;  %v2439_v63 = vpack.c.bf16 %v1169_v62, %v1168_v61 }
  0x2f   : > { %2436 = vmatprep.subr.bf16.mxu0 %v2435_v51 }
  0x30   : > { %2208 = vmatmul.mubr.msk.f32.gmra.mrb[12].mxu0 %vm450_vm0, %v396_v52  ;;  %v442_v52 = vsub.s32 0, %v2941_v50 }
  0x31   : > { %653 = vmatprep.mubr.f32.mxu0 %v2593_v7  ;;  %2412 = vmatpush1.bf16.msra.mxu1 %v2411_v1  ;;  %v1171_v1 = vld [vmem:[%s3577_s5 + $0x38] sm:$0xff] }
  0x32   : > { %2413 = vmatprep.subr.bf16.mxu1 %v2594_v26  ;;  %2438 = vmatpush3.bf16.msra.mxu0 %v2435_v51  ;;  %v2950_v55 = vrot.slane %v438_v53, %v442_v52 }
  0x33   : > { %2440 = vmatprep.subr.bf16.mxu0 %v2439_v63 }
  0x34   : > { %2209 = vmatmul.mubr.msk.f32.gmra.mrb[14].mxu0 %vm450_vm0, %v397_v56  ;;  %v2954_v56 = vrot.slane %v438_v53, %v446_v54 }
  0x35   : > { %659 = vmatprep.mubr.f32.mxu0 %v2593_v7  ;;  %2415 = vmatpush1.bf16.msra.mxu1 %v2414_v5  ;;  %v1172_v5 = vld [vmem:[%s3577_s5 + $0x40] sm:$0xff] }
  0x36   : > { %2416 = vmatprep.subr.bf16.mxu1 %v2594_v26  ;;  %2442 = vmatpush3.bf16.msra.mxu0 %v2439_v63  ;;  %v2447_v12 = vpack.c.bf16 %v1173_v6, %v1172_v5 }
  0x38   : > { %2210 = vmatmul.mubr.msk.f32.gmra.mrb[16].mxu0 %vm450_vm0, %v398_v60 }
  0x39   : > { %665 = vmatprep.mubr.f32.mxu0 %v2593_v7  ;;  %2418 = vmatpush1.bf16.msra.mxu1 %v2417_v10 }
  0x3a   : > { %2419 = vmatprep.subr.bf16.mxu1 %v2594_v26 }
  0x3c   : > { %2211 = vmatmul.mubr.msk.f32.gmra.mrb[18].mxu0 %vm450_vm0, %v399_v0  ;;  %v1170_v0 = vld [vmem:[%s3577_s5 + $0x30] sm:$0xff] }
  0x3d   : > { %671 = vmatprep.mubr.f32.mxu0 %v2593_v7  ;;  %2421 = vmatpush1.bf16.msra.mxu1 %v2420_v14 }
  0x3e   : > { %2422 = vmatprep.subr.bf16.mxu1 %v2594_v26 }
  0x40   : > { %2212 = vmatmul.mubr.msk.f32.gmra.mrb[20].mxu0 %vm450_vm0, %v400_v4  ;;  %v2443_v4 = vpack.c.bf16 %v1171_v1, %v1170_v0 }
  0x41   : > { %677 = vmatprep.mubr.f32.mxu0 %v2593_v7  ;;  %2424 = vmatpush1.bf16.msra.mxu1 %v2423_v18 }
  0x42   : > { %2425 = vmatprep.subr.bf16.mxu1 %v2594_v26  ;;  %2444 = vmatprep.subr.bf16.mxu0 %v2443_v4 }
  0x43   : > { %2446 = vmatpush3.bf16.msra.mxu0 %v2443_v4 }
  0x44   : > { %2213 = vmatmul.mubr.msk.f32.gmra.mrb[22].mxu0 %vm450_vm0, %v401_v9  ;;  %2448 = vmatprep.subr.bf16.mxu0 %v2447_v12 }
  0x45   : > { %683 = vmatprep.mubr.f32.mxu0 %v2593_v7  ;;  %2427 = vmatpush1.bf16.msra.mxu1 %v2426_v30 }
  0x46   : > { %2428 = vmatprep.subr.bf16.mxu1 %v2594_v26 }
  0x47   : > { %2450 = vmatpush3.bf16.msra.mxu0 %v2447_v12 }
  0x48   : > { %2214 = vmatmul.mubr.msk.f32.gmra.mrb[24].mxu0 %vm450_vm0, %v402_v13 }
  0x49   : > { %689 = vmatprep.mubr.f32.mxu0 %v2593_v7  ;;  %2430 = vmatpush1.bf16.msra.mxu1 %v2429_v34  ;;  %v1178_v34 = vld [vmem:[%s3577_s5 + $0x70] sm:$0xff] }
  0x4c   : > { %2215 = vmatmul.mubr.msk.f32.gmra.mrb[26].mxu0 %vm450_vm0, %v403_v17 }
  0x4d   : > { %695 = vmatprep.mubr.f32.mxu0 %v2593_v7 }
  0x50   : > { %2216 = vmatmul.mubr.msk.f32.gmra.mrb[28].mxu0 %vm450_vm0, %v404_v19 }
  0x51   : > { %701 = vmatprep.mubr.f32.mxu0 %v2593_v7 }
  0x54   : > { %2217 = vmatmul.mubr.msk.f32.gmra.mrb[30].mxu0 %vm450_vm0, %v405_v20 }
  0x55   : > { %707 = vmatprep.mubr.f32.mxu0 %v2593_v7 }
  0x58   : > { %2218 = vmatmul.mubr.msk.f32.gmra.mrb[32].mxu0 %vm450_vm0, %v406_v21  ;;  %v2451_v21 = vpack.c.bf16 %v1175_v16, %v1174_v15 }
  0x59   : > { %713 = vmatprep.mubr.f32.mxu0 %v2593_v7 }
  0x5a   : > { %2452 = vmatprep.subr.bf16.mxu0 %v2451_v21 }
  0x5b   : > { %2454 = vmatpush3.bf16.msra.mxu0 %v2451_v21 }
  0x5c   : > { %2219 = vmatmul.mubr.msk.f32.gmra.mrb[34].mxu0 %vm450_vm0, %v407_v22 }
  0x5d   : > { %719 = vmatprep.mubr.f32.mxu0 %v2593_v7 }
  0x60   : > { %2220 = vmatmul.mubr.msk.f32.gmra.mrb[36].mxu0 %vm450_vm0, %v408_v23 }
  0x61   : > { %725 = vmatprep.mubr.f32.mxu0 %v2593_v7 }
  0x64   : > { %2221 = vmatmul.mubr.msk.f32.gmra.mrb[38].mxu0 %vm450_vm0, %v409_v24  ;;  %v1176_v24 = vld [vmem:[%s3577_s5 + $0x60] sm:$0xff] }
  0x65   : > { %731 = vmatprep.mubr.f32.mxu0 %v2593_v7 }
  0x68   : > { %2222 = vmatmul.mubr.msk.f32.gmra.mrb[40].mxu0 %vm450_vm0, %v410_v25  ;;  %v1177_v25 = vld [vmem:[%s3577_s5 + $0x68] sm:$0xff] }
  0x69   : > { %737 = vmatprep.mubr.f32.mxu0 %v2593_v7  ;;  %v2455_v31 = vpack.c.bf16 %v1177_v25, %v1176_v24 }
  0x6b   : > { %2456 = vmatprep.subr.bf16.mxu0 %v2455_v31 }
  0x6c   : > { %2223 = vmatmul.mubr.msk.f32.gmra.mrb[42].mxu0 %vm450_vm0, %v411_v29 }
  0x6d   : > { %743 = vmatprep.mubr.f32.mxu0 %v2593_v7  ;;  %2458 = vmatpush3.bf16.msra.mxu0 %v2455_v31 }
  0x70   : > { %2224 = vmatmul.mubr.msk.f32.gmra.mrb[44].mxu0 %vm450_vm0, %v412_v33 }
  0x71   : > { %749 = vmatprep.mubr.f32.mxu0 %v2593_v7 }
  0x74   : > { %2225 = vmatmul.mubr.msk.f32.gmra.mrb[46].mxu0 %vm450_vm0, %v413_v35  ;;  %v1179_v35 = vld [vmem:[%s3577_s5 + $0x78] sm:$0xff] }
  0x75   : > { %755 = vmatprep.mubr.f32.mxu0 %v2593_v7 }
  0x78   : > { %2226 = vmatmul.mubr.msk.f32.gmra.mrb[48].mxu0 %vm450_vm0, %v414_v36 }
  0x79   : > { %761 = vmatprep.mubr.f32.mxu0 %v2593_v7 }
  0x7c   : > { %2227 = vmatmul.mubr.msk.f32.gmra.mrb[50].mxu0 %vm450_vm0, %v415_v37 }
  0x7d   : > { %767 = vmatprep.mubr.f32.mxu0 %v2593_v7 }
  0x80   : > { %2228 = vmatmul.mubr.msk.f32.gmra.mrb[52].mxu0 %vm450_vm0, %v416_v38 }
  0x81   : > { %773 = vmatprep.mubr.f32.mxu0 %v2593_v7 }
  0x84   : > { %2229 = vmatmul.mubr.msk.f32.gmra.mrb[54].mxu0 %vm450_vm0, %v417_v39 }
  0x85   : > { %779 = vmatprep.mubr.f32.mxu0 %v2593_v7 }
  0x88   : > { %2230 = vmatmul.mubr.msk.f32.gmra.mrb[56].mxu0 %vm450_vm0, %v418_v40  ;;  %v2459_v40 = vpack.c.bf16 %v1179_v35, %v1178_v34 }
  0x89   : > { %785 = vmatprep.mubr.f32.mxu0 %v2593_v7 }
  0x8a   : > { %2460 = vmatprep.subr.bf16.mxu0 %v2459_v40 }
  0x8b   : > { %2462 = vmatpush3.bf16.msra.mxu0 %v2459_v40 }
  0x8c   : > { %2231 = vmatmul.mubr.msk.f32.gmra.mrb[58].mxu0 %vm450_vm0, %v419_v41  ;;  %2495 = vmatprep.subr.bf16.mxu0 %v2594_v26 }
  0x8d   : > { %791 = vmatprep.mubr.f32.mxu0 %v2593_v7 }
  0x90   : > { %2232 = vmatmul.mubr.msk.f32.gmra.mrb[60].mxu0 %vm450_vm0, %v420_v42 }
  0x91   : > { %797 = vmatprep.mubr.f32.mxu0 %v2593_v7 }
  0x94   : > { %2233 = vmatmul.mubr.msk.f32.gmra.mrb[62].mxu0 %vm450_vm0, %v421_v43 }
  0xeb   : > { %v613_v57 = vpop.f32.mrb[0].mxu0 }
  0xec   : > { %v614_v58 = vadd.f32 %v613_v57, %v2950_v55  ;;  %v615_v59 = vpop.f32.mrb[1].mxu0 }
  0xed   : > { %v616_v60 = vadd.f32 %v615_v59, %v2954_v56 }
  0xee   : > { %v804_v8 = vmax.f32 %v614_v58, 0.0 }
  0xef   : > { %v619_v2 = vpop.f32.mrb[2].mxu0  ;;  %v805_v3 = vmax.f32 %v616_v60, 0.0 }
  0xf0   : > { %v620_v9 = vadd.f32 %v619_v2, %v2950_v55  ;;  %v621_v10 = vpop.f32.mrb[3].mxu0 }
  0xf1   : > { %v622_v11 = vadd.f32 %v621_v10, %v2954_v56  ;;  %971 = vmatprep.mubr.f32.mxu1 %v805_v3 }
  0xf2   : > { %972 = vmatmul.mubr.f32.vlgmr.msra.gmra.mrb[0].mxu1 %v804_v8  ;;  %v806_v17 = vmax.f32 %v620_v9, 0.0 }
  0xf3   : > { %v807_v13 = vmax.f32 %v622_v11, 0.0  ;;  %v625_v14 = vpop.f32.mrb[4].mxu0 }
  0xf4   : > { %v626_v18 = vadd.f32 %v625_v14, %v2950_v55  ;;  %v627_v19 = vpop.f32.mrb[5].mxu0 }
  0xf5   : > { %v628_v20 = vadd.f32 %v627_v19, %v2954_v56  ;;  %976 = vmatprep.mubr.f32.mxu1 %v807_v13 }
  0xf6   : > { %977 = vmatmul.mubr.f32.gmra.mrb[2].mxu1 %v806_v17  ;;  %v808_v27 = vmax.f32 %v626_v18, 0.0 }
  0xf7   : > { %v809_v22 = vmax.f32 %v628_v20, 0.0  ;;  %v631_v23 = vpop.f32.mrb[6].mxu0 }
  0xf8   : > { %v632_v28 = vadd.f32 %v631_v23, %v2950_v55  ;;  %v633_v29 = vpop.f32.mrb[7].mxu0 }
  0xf9   : > { %v634_v30 = vadd.f32 %v633_v29, %v2954_v56  ;;  %981 = vmatprep.mubr.f32.mxu1 %v809_v22 }
  0xfa   : > { %982 = vmatmul.mubr.f32.gmra.mrb[4].mxu1 %v808_v27  ;;  %v810_v36 = vmax.f32 %v632_v28, 0.0 }
  0xfb   : > { %v811_v32 = vmax.f32 %v634_v30, 0.0  ;;  %v637_v33 = vpop.f32.mrb[8].mxu0 }
  0xfc   : > { %v638_v37 = vadd.f32 %v637_v33, %v2950_v55  ;;  %v639_v38 = vpop.f32.mrb[9].mxu0 }
  0xfd   : > { %v640_v39 = vadd.f32 %v639_v38, %v2954_v56  ;;  %986 = vmatprep.mubr.f32.mxu1 %v811_v32 }
  0xfe   : > { %987 = vmatmul.mubr.f32.gmra.mrb[6].mxu1 %v810_v36  ;;  %v812_v43 = vmax.f32 %v638_v37, 0.0 }
  0xff   : > { %v813_v41 = vmax.f32 %v640_v39, 0.0  ;;  %v643_v42 = vpop.f32.mrb[10].mxu0 }
 0x100   : > { %v644_v44 = vadd.f32 %v643_v42, %v2950_v55  ;;  %v645_v45 = vpop.f32.mrb[11].mxu0 }
 0x101   : > { %v646_v46 = vadd.f32 %v645_v45, %v2954_v56  ;;  %991 = vmatprep.mubr.f32.mxu1 %v813_v41 }
 0x102   : > { %992 = vmatmul.mubr.f32.gmra.mrb[8].mxu1 %v812_v43  ;;  %v814_v49 = vmax.f32 %v644_v44, 0.0 }
 0x103   : > { %v815_v47 = vmax.f32 %v646_v46, 0.0  ;;  %v649_v48 = vpop.f32.mrb[12].mxu0 }
 0x104   : > { %v650_v51 = vadd.f32 %v649_v48, %v2950_v55  ;;  %v651_v53 = vpop.f32.mrb[13].mxu0 }
 0x105   : > { %v652_v57 = vadd.f32 %v651_v53, %v2954_v56  ;;  %996 = vmatprep.mubr.f32.mxu1 %v815_v47 }
 0x106   : > { %997 = vmatmul.mubr.f32.gmra.mrb[10].mxu1 %v814_v49  ;;  %v816_v60 = vmax.f32 %v650_v51, 0.0 }
 0x107   : > { %v817_v58 = vmax.f32 %v652_v57, 0.0  ;;  %v655_v59 = vpop.f32.mrb[14].mxu0 }
 0x108   : > { %v656_v61 = vadd.f32 %v655_v59, %v2950_v55  ;;  %v657_v62 = vpop.f32.mrb[15].mxu0 }
 0x109   : > { %v658_v63 = vadd.f32 %v657_v62, %v2954_v56  ;;  %1001 = vmatprep.mubr.f32.mxu1 %v817_v58 }
 0x10a   : > { %1002 = vmatmul.mubr.f32.gmra.mrb[12].mxu1 %v816_v60  ;;  %v818_v2 = vmax.f32 %v656_v61, 0.0 }
 0x10b   : > { %v819_v0 = vmax.f32 %v658_v63, 0.0  ;;  %v661_v1 = vpop.f32.mrb[16].mxu0 }
 0x10c   : > { %v662_v3 = vadd.f32 %v661_v1, %v2950_v55  ;;  %v663_v4 = vpop.f32.mrb[17].mxu0 }
 0x10d   : > { %v664_v5 = vadd.f32 %v663_v4, %v2954_v56  ;;  %1006 = vmatprep.mubr.f32.mxu1 %v819_v0 }
 0x10e   : > { %1007 = vmatmul.mubr.f32.gmra.mrb[14].mxu1 %v818_v2  ;;  %v820_v9 = vmax.f32 %v662_v3, 0.0 }
 0x10f   : > { %v821_v6 = vmax.f32 %v664_v5, 0.0  ;;  %v667_v8 = vpop.f32.mrb[18].mxu0 }
 0x110   : > { %v668_v10 = vadd.f32 %v667_v8, %v2950_v55  ;;  %v669_v11 = vpop.f32.mrb[19].mxu0 }
 0x111   : > { %v670_v12 = vadd.f32 %v669_v11, %v2954_v56  ;;  %1011 = vmatprep.mubr.f32.mxu1 %v821_v6 }
 0x112   : > { %1012 = vmatmul.mubr.f32.gmra.mrb[16].mxu1 %v820_v9  ;;  %v822_v15 = vmax.f32 %v668_v10, 0.0 }
 0x113   : > { %v823_v13 = vmax.f32 %v670_v12, 0.0  ;;  %v673_v14 = vpop.f32.mrb[20].mxu0 }
 0x114   : > { %v674_v16 = vadd.f32 %v673_v14, %v2950_v55  ;;  %v675_v17 = vpop.f32.mrb[21].mxu0 }
 0x115   : > { %v676_v18 = vadd.f32 %v675_v17, %v2954_v56  ;;  %1016 = vmatprep.mubr.f32.mxu1 %v823_v13 }
 0x116   : > { %1017 = vmatmul.mubr.f32.gmra.mrb[18].mxu1 %v822_v15  ;;  %v824_v21 = vmax.f32 %v674_v16, 0.0 }
 0x117   : > { %v825_v19 = vmax.f32 %v676_v18, 0.0  ;;  %v679_v20 = vpop.f32.mrb[22].mxu0 }
 0x118   : > { %v680_v22 = vadd.f32 %v679_v20, %v2950_v55  ;;  %v681_v23 = vpop.f32.mrb[23].mxu0 }
 0x119   : > { %v682_v24 = vadd.f32 %v681_v23, %v2954_v56  ;;  %1021 = vmatprep.mubr.f32.mxu1 %v825_v19 }
 0x11a   : > { %1022 = vmatmul.mubr.f32.gmra.mrb[20].mxu1 %v824_v21  ;;  %v826_v28 = vmax.f32 %v680_v22, 0.0 }
 0x11b   : > { %v827_v25 = vmax.f32 %v682_v24, 0.0  ;;  %v685_v27 = vpop.f32.mrb[24].mxu0 }
 0x11c   : > { %v686_v29 = vadd.f32 %v685_v27, %v2950_v55  ;;  %v687_v30 = vpop.f32.mrb[25].mxu0 }
 0x11d   : > { %v688_v31 = vadd.f32 %v687_v30, %v2954_v56  ;;  %1026 = vmatprep.mubr.f32.mxu1 %v827_v25 }
 0x11e   : > { %1027 = vmatmul.mubr.f32.gmra.mrb[22].mxu1 %v826_v28  ;;  %v828_v34 = vmax.f32 %v686_v29, 0.0 }
 0x11f   : > { %v829_v32 = vmax.f32 %v688_v31, 0.0  ;;  %v691_v33 = vpop.f32.mrb[26].mxu0 }
 0x120   : > { %v692_v35 = vadd.f32 %v691_v33, %v2950_v55  ;;  %v693_v36 = vpop.f32.mrb[27].mxu0 }
 0x121   : > { %v694_v37 = vadd.f32 %v693_v36, %v2954_v56  ;;  %1031 = vmatprep.mubr.f32.mxu1 %v829_v32 }
 0x122   : > { %1032 = vmatmul.mubr.f32.gmra.mrb[24].mxu1 %v828_v34  ;;  %v830_v40 = vmax.f32 %v692_v35, 0.0 }
 0x123   : > { %v831_v38 = vmax.f32 %v694_v37, 0.0  ;;  %v697_v39 = vpop.f32.mrb[28].mxu0 }
 0x124   : > { %v698_v41 = vadd.f32 %v697_v39, %v2950_v55  ;;  %v699_v42 = vpop.f32.mrb[29].mxu0 }
 0x125   : > { %v700_v43 = vadd.f32 %v699_v42, %v2954_v56  ;;  %1036 = vmatprep.mubr.f32.mxu1 %v831_v38 }
 0x126   : > { %1037 = vmatmul.mubr.f32.gmra.mrb[26].mxu1 %v830_v40  ;;  %v832_v46 = vmax.f32 %v698_v41, 0.0 }
 0x127   : > { %v833_v44 = vmax.f32 %v700_v43, 0.0  ;;  %v703_v45 = vpop.f32.mrb[30].mxu0 }
 0x128   : > { %v704_v47 = vadd.f32 %v703_v45, %v2950_v55  ;;  %v705_v48 = vpop.f32.mrb[31].mxu0 }
 0x129   : > { %v706_v49 = vadd.f32 %v705_v48, %v2954_v56  ;;  %1041 = vmatprep.mubr.f32.mxu1 %v833_v44 }
 0x12a   : > { %1042 = vmatmul.mubr.f32.gmra.mrb[28].mxu1 %v832_v46  ;;  %v834_v57 = vmax.f32 %v704_v47, 0.0 }
 0x12b   : > { %v835_v51 = vmax.f32 %v706_v49, 0.0  ;;  %v709_v53 = vpop.f32.mrb[32].mxu0 }
 0x12c   : > { %v710_v58 = vadd.f32 %v709_v53, %v2950_v55  ;;  %v711_v59 = vpop.f32.mrb[33].mxu0 }
 0x12d   : > { %v712_v60 = vadd.f32 %v711_v59, %v2954_v56  ;;  %1046 = vmatprep.mubr.f32.mxu1 %v835_v51 }
 0x12e   : > { %1047 = vmatmul.mubr.f32.gmra.mrb[30].mxu1 %v834_v57  ;;  %v836_v63 = vmax.f32 %v710_v58, 0.0 }
 0x12f   : > { %v837_v61 = vmax.f32 %v712_v60, 0.0  ;;  %v715_v62 = vpop.f32.mrb[34].mxu0 }
 0x130   : > { %v716_v0 = vadd.f32 %v715_v62, %v2950_v55  ;;  %v717_v1 = vpop.f32.mrb[35].mxu0 }
 0x131   : > { %v718_v2 = vadd.f32 %v717_v1, %v2954_v56  ;;  %1051 = vmatprep.mubr.f32.mxu1 %v837_v61 }
 0x132   : > { %1052 = vmatmul.mubr.f32.gmra.mrb[32].mxu1 %v836_v63  ;;  %v838_v5 = vmax.f32 %v716_v0, 0.0 }
 0x133   : > { %v839_v3 = vmax.f32 %v718_v2, 0.0  ;;  %v721_v4 = vpop.f32.mrb[36].mxu0 }
 0x134   : > { %v722_v6 = vadd.f32 %v721_v4, %v2950_v55  ;;  %v723_v8 = vpop.f32.mrb[37].mxu0 }
 0x135   : > { %v724_v9 = vadd.f32 %v723_v8, %v2954_v56  ;;  %1056 = vmatprep.mubr.f32.mxu1 %v839_v3 }
 0x136   : > { %1057 = vmatmul.mubr.f32.gmra.mrb[34].mxu1 %v838_v5  ;;  %v840_v12 = vmax.f32 %v722_v6, 0.0 }
 0x137   : > { %v841_v10 = vmax.f32 %v724_v9, 0.0  ;;  %v727_v11 = vpop.f32.mrb[38].mxu0 }
 0x138   : > { %v728_v13 = vadd.f32 %v727_v11, %v2950_v55  ;;  %v729_v14 = vpop.f32.mrb[39].mxu0 }
 0x139   : > { %v730_v15 = vadd.f32 %v729_v14, %v2954_v56  ;;  %1061 = vmatprep.mubr.f32.mxu1 %v841_v10 }
 0x13a   : > { %1062 = vmatmul.mubr.f32.gmra.mrb[36].mxu1 %v840_v12  ;;  %v842_v18 = vmax.f32 %v728_v13, 0.0 }
 0x13b   : > { %v843_v16 = vmax.f32 %v730_v15, 0.0  ;;  %v733_v17 = vpop.f32.mrb[40].mxu0 }
 0x13c   : > { %v734_v19 = vadd.f32 %v733_v17, %v2950_v55  ;;  %v735_v20 = vpop.f32.mrb[41].mxu0 }
 0x13d   : > { %v736_v21 = vadd.f32 %v735_v20, %v2954_v56  ;;  %1066 = vmatprep.mubr.f32.mxu1 %v843_v16 }
 0x13e   : > { %1067 = vmatmul.mubr.f32.gmra.mrb[38].mxu1 %v842_v18  ;;  %v844_v24 = vmax.f32 %v734_v19, 0.0 }
 0x13f   : > { %v845_v22 = vmax.f32 %v736_v21, 0.0  ;;  %v739_v23 = vpop.f32.mrb[42].mxu0 }
 0x140   : > { %v740_v25 = vadd.f32 %v739_v23, %v2950_v55  ;;  %v741_v27 = vpop.f32.mrb[43].mxu0 }
 0x141   : > { %v742_v28 = vadd.f32 %v741_v27, %v2954_v56  ;;  %1071 = vmatprep.mubr.f32.mxu1 %v845_v22 }
 0x142   : > { %1072 = vmatmul.mubr.f32.gmra.mrb[40].mxu1 %v844_v24  ;;  %v846_v31 = vmax.f32 %v740_v25, 0.0 }
 0x143   : > { %v847_v29 = vmax.f32 %v742_v28, 0.0  ;;  %v745_v30 = vpop.f32.mrb[44].mxu0 }
 0x144   : > { %v746_v32 = vadd.f32 %v745_v30, %v2950_v55  ;;  %v747_v33 = vpop.f32.mrb[45].mxu0 }
 0x145   : > { %v748_v34 = vadd.f32 %v747_v33, %v2954_v56  ;;  %1076 = vmatprep.mubr.f32.mxu1 %v847_v29 }
 0x146   : > { %1077 = vmatmul.mubr.f32.gmra.mrb[42].mxu1 %v846_v31  ;;  %v848_v37 = vmax.f32 %v746_v32, 0.0 }
 0x147   : > { %v849_v35 = vmax.f32 %v748_v34, 0.0  ;;  %v751_v36 = vpop.f32.mrb[46].mxu0  ;;  %v1445_v34 = vld [vmem:[%s3579_s7 + $0x8] sm:$0xff] }
 0x148   : > { %v752_v38 = vadd.f32 %v751_v36, %v2950_v55  ;;  %v753_v39 = vpop.f32.mrb[47].mxu0  ;;  %v1446_v36 = vld [vmem:[%s3579_s7 + $0x10] sm:$0xff] }
 0x149   : > { %v754_v40 = vadd.f32 %v753_v39, %v2954_v56  ;;  %1081 = vmatprep.mubr.f32.mxu1 %v849_v35  ;;  %v1447_v35 = vld [vmem:[%s3579_s7 + $0x18] sm:$0xff] }
 0x14a   : > { %1082 = vmatmul.mubr.f32.gmra.mrb[44].mxu1 %v848_v37  ;;  %v850_v43 = vmax.f32 %v752_v38, 0.0  ;;  %v1449_v38 = vld [vmem:[%s3579_s7 + $0x28] sm:$0xff]  ;;  %v1451_v39 = vld [vmem:[%s3579_s7 + $0x38] sm:$0xff] }
 0x14b   : > { %v851_v41 = vmax.f32 %v754_v40, 0.0  ;;  %v757_v42 = vpop.f32.mrb[48].mxu0  ;;  %v1448_v40 = vld [vmem:[%s3579_s7 + $0x20] sm:$0xff] }
 0x14c   : > { %v758_v44 = vadd.f32 %v757_v42, %v2950_v55  ;;  %v759_v45 = vpop.f32.mrb[49].mxu0  ;;  %v1450_v42 = vld [vmem:[%s3579_s7 + $0x30] sm:$0xff] }
 0x14d   : > { %v760_v46 = vadd.f32 %v759_v45, %v2954_v56  ;;  %1086 = vmatprep.mubr.f32.mxu1 %v851_v41  ;;  %v2467_v41 = vpack.c.bf16 %v1451_v39, %v1449_v38  ;;  %v1472_v38 = vld [vmem:[%s3579_s7 + $0xe0] sm:$0xff]  ;;  %v1474_v39 = vld [vmem:[%s3579_s7 + $0xf0] sm:$0xff] }
 0x14e   : > { %1087 = vmatmul.mubr.f32.gmra.mrb[46].mxu1 %v850_v43  ;;  %v852_v49 = vmax.f32 %v758_v44, 0.0  ;;  %v2469_v43 = vpack.c.bf16 %v1450_v42, %v1448_v40  ;;  %v3085_v44 = vld [vmem:[%s3576_s4] ss:$0 sm:$0xff] }
 0x14f   : > { %v853_v47 = vmax.f32 %v760_v46, 0.0  ;;  %v763_v48 = vpop.f32.mrb[50].mxu0 }
 0x150   : > { %v764_v51 = vadd.f32 %v763_v48, %v2950_v55  ;;  %v765_v53 = vpop.f32.mrb[51].mxu0  ;;  %v1453_v48 = vld [vmem:[%s3579_s7 + $0x48] sm:$0xff] }
 0x151   : > { %v766_v57 = vadd.f32 %v765_v53, %v2954_v56  ;;  %1091 = vmatprep.mubr.f32.mxu1 %v853_v47 }
 0x152   : > { %1092 = vmatmul.mubr.f32.gmra.mrb[48].mxu1 %v852_v49  ;;  %v854_v60 = vmax.f32 %v764_v51, 0.0  ;;  %v1455_v49 = vld [vmem:[%s3579_s7 + $0x58] sm:$0xff]  ;;  %v1452_v51 = vld [vmem:[%s3579_s7 + $0x40] sm:$0xff] }
 0x153   : > { %v855_v58 = vmax.f32 %v766_v57, 0.0  ;;  %v769_v59 = vpop.f32.mrb[52].mxu0  ;;  %v2471_v53 = vpack.c.bf16 %v1455_v49, %v1453_v48  ;;  %v1454_v57 = vld [vmem:[%s3579_s7 + $0x50] sm:$0xff] }
 0x154   : > { %v770_v61 = vadd.f32 %v769_v59, %v2950_v55  ;;  %v771_v62 = vpop.f32.mrb[53].mxu0  ;;  %v1459_v59 = vld [vmem:[%s3579_s7 + $0x78] sm:$0xff] }
 0x155   : > { %v772_v63 = vadd.f32 %v771_v62, %v2954_v56  ;;  %1096 = vmatprep.mubr.f32.mxu1 %v855_v58  ;;  %v1457_v58 = vld [vmem:[%s3579_s7 + $0x68] sm:$0xff] }
 0x156   : > { %1097 = vmatmul.mubr.f32.gmra.mrb[50].mxu1 %v854_v60  ;;  %v856_v2 = vmax.f32 %v770_v61, 0.0  ;;  %v2473_v61 = vpack.c.bf16 %v1454_v57, %v1452_v51  ;;  %v2475_v62 = vpack.c.bf16 %v1459_v59, %v1457_v58 }
 0x157   : > { %v857_v0 = vmax.f32 %v772_v63, 0.0  ;;  %v775_v1 = vpop.f32.mrb[54].mxu0  ;;  %v1456_v63 = vld [vmem:[%s3579_s7 + $0x60] sm:$0xff] }
 0x158   : > { %v776_v3 = vadd.f32 %v775_v1, %v2950_v55  ;;  %v777_v4 = vpop.f32.mrb[55].mxu0  ;;  %v1461_v1 = vld [vmem:[%s3579_s7 + $0x88] sm:$0xff] }
 0x159   : > { %v778_v5 = vadd.f32 %v777_v4, %v2954_v56  ;;  %1101 = vmatprep.mubr.f32.mxu1 %v857_v0  ;;  %v1458_v0 = vld [vmem:[%s3579_s7 + $0x70] sm:$0xff] }
 0x15a   : > { %1102 = vmatmul.mubr.f32.gmra.mrb[52].mxu1 %v856_v2  ;;  %v858_v9 = vmax.f32 %v776_v3, 0.0  ;;  %v1463_v3 = vld [vmem:[%s3579_s7 + $0x98] sm:$0xff] }
 0x15b   : > { %v859_v6 = vmax.f32 %v778_v5, 0.0  ;;  %v781_v8 = vpop.f32.mrb[56].mxu0 }
 0x15c   : > { %v782_v10 = vadd.f32 %v781_v8, %v2950_v55  ;;  %v783_v11 = vpop.f32.mrb[57].mxu0  ;;  %v2479_v8 = vpack.c.bf16 %v1463_v3, %v1461_v1 }
 0x15d   : > { %v784_v12 = vadd.f32 %v783_v11, %v2954_v56  ;;  %1106 = vmatprep.mubr.f32.mxu1 %v859_v6  ;;  %v2477_v6 = vpack.c.bf16 %v1458_v0, %v1456_v63 }
 0x15e   : > { %1107 = vmatmul.mubr.f32.gmra.mrb[54].mxu1 %v858_v9  ;;  %v860_v15 = vmax.f32 %v782_v10, 0.0  ;;  %v1460_v9 = vld [vmem:[%s3579_s7 + $0x80] sm:$0xff]  ;;  %v1462_v10 = vld [vmem:[%s3579_s7 + $0x90] sm:$0xff] }
 0x15f   : > { %v861_v13 = vmax.f32 %v784_v12, 0.0  ;;  %v787_v14 = vpop.f32.mrb[58].mxu0  ;;  %v1465_v12 = vld [vmem:[%s3579_s7 + $0xa8] sm:$0xff] }
 0x160   : > { %v788_v16 = vadd.f32 %v787_v14, %v2950_v55  ;;  %v789_v17 = vpop.f32.mrb[59].mxu0 }
 0x161   : > { %v790_v18 = vadd.f32 %v789_v17, %v2954_v56  ;;  %1111 = vmatprep.mubr.f32.mxu1 %v861_v13  ;;  %v1467_v13 = vld [vmem:[%s3579_s7 + $0xb8] sm:$0xff]  ;;  %v2481_v17 = vpack.c.bf16 %v1462_v10, %v1460_v9 }
 0x162   : > { %1112 = vmatmul.mubr.f32.gmra.mrb[56].mxu1 %v860_v15  ;;  %v862_v21 = vmax.f32 %v788_v16, 0.0 }
 0x163   : > { %v863_v19 = vmax.f32 %v790_v18, 0.0  ;;  %v793_v20 = vpop.f32.mrb[60].mxu0  ;;  %v2483_v18 = vpack.c.bf16 %v1467_v13, %v1465_v12 }
 0x164   : > { %v794_v22 = vadd.f32 %v793_v20, %v2950_v55  ;;  %v795_v23 = vpop.f32.mrb[61].mxu0  ;;  %v1466_v20 = vld [vmem:[%s3579_s7 + $0xb0] sm:$0xff] }
 0x165   : > { %v796_v24 = vadd.f32 %v795_v23, %v2954_v56  ;;  %1116 = vmatprep.mubr.f32.mxu1 %v863_v19  ;;  %v1464_v19 = vld [vmem:[%s3579_s7 + $0xa0] sm:$0xff]  ;;  %v1471_v23 = vld [vmem:[%s3579_s7 + $0xd8] sm:$0xff] }
 0x166   : > { %1117 = vmatmul.mubr.f32.gmra.mrb[58].mxu1 %v862_v21  ;;  %v864_v28 = vmax.f32 %v794_v22, 0.0  ;;  %v1469_v22 = vld [vmem:[%s3579_s7 + $0xc8] sm:$0xff] }
 0x167   : > { %v865_v25 = vmax.f32 %v796_v24, 0.0  ;;  %v799_v27 = vpop.f32.mrb[62].mxu0 }
 0x168   : > { %v800_v29 = vadd.f32 %v799_v27, %v2950_v55  ;;  %v801_v30 = vpop.f32.mrb[63].mxu0  ;;  %v1444_v55 = vld [vmem:[%s3579_s7] sm:$0xff] }
 0x169   : > { %v802_v31 = vadd.f32 %v801_v30, %v2954_v56  ;;  %1121 = vmatprep.mubr.f32.mxu1 %v865_v25  ;;  %v2463_v56 = vpack.c.bf16 %v1447_v35, %v1445_v34  ;;  %v2465_v37 = vpack.c.bf16 %v1446_v36, %v1444_v55  ;;  %v1468_v30 = vld [vmem:[%s3579_s7 + $0xc0] sm:$0xff]  ;;  %v1475_v34 = vld [vmem:[%s3579_s7 + $0xf8] sm:$0xff] }
 0x16a   : > { %1122 = vmatmul.mubr.f32.gmra.mrb[60].mxu1 %v864_v28  ;;  %v866_v33 = vmax.f32 %v800_v29, 0.0  ;;  %v2485_v28 = vpack.c.bf16 %v1466_v20, %v1464_v19  ;;  %v2487_v29 = vpack.c.bf16 %v1471_v23, %v1469_v22 }
 0x16b   : > { %v867_v32 = vmax.f32 %v802_v31, 0.0  ;;  %2464 = vmatprep.subr.bf16.mxu1 %v2463_v56  ;;  %v1470_v31 = vld [vmem:[%s3579_s7 + $0xd0] sm:$0xff] }
 0x16c   : > { %2466 = vmatpush1.bf16.msra.mxu1 %v2465_v37  ;;  %v2489_v36 = vpack.c.bf16 %v1470_v31, %v1468_v30 }
 0x16d   : > { %1126 = vmatprep.mubr.f32.mxu1 %v867_v32  ;;  %2468 = vmatprep.subr.bf16.mxu1 %v2467_v41 }
 0x16e   : > { %1127 = vmatmul.mubr.f32.gmra.mrb[62].mxu1 %v866_v33  ;;  %v1473_v33 = vld [vmem:[%s3579_s7 + $0xe8] sm:$0xff] }
 0x16f   : > { %1552 = vmatprep.mubr.f32.mxu1 %v2593_v7  ;;  %v2491_v37 = vpack.c.bf16 %v1475_v34, %v1473_v33 }
 0x170   : > { %2470 = vmatpush1.bf16.msra.mxu1 %v2469_v43 }
 0x171   : > { %2472 = vmatprep.subr.bf16.mxu1 %v2471_v53 }
 0x174   : > { %2474 = vmatpush1.bf16.msra.mxu1 %v2473_v61 }
 0x175   : > { %2476 = vmatprep.subr.bf16.mxu1 %v2475_v62 }
 0x178   : > { %2478 = vmatpush1.bf16.msra.mxu1 %v2477_v6 }
 0x179   : > { %2480 = vmatprep.subr.bf16.mxu1 %v2479_v8 }
 0x17c   : > { %2482 = vmatpush1.bf16.msra.mxu1 %v2481_v17 }
 0x17d   : > { %2484 = vmatprep.subr.bf16.mxu1 %v2483_v18 }
 0x180   : > { %2486 = vmatpush1.bf16.msra.mxu1 %v2485_v28 }
 0x181   : > { %2488 = vmatprep.subr.bf16.mxu1 %v2487_v29 }
 0x184   : > { %2490 = vmatpush1.bf16.msra.mxu1 %v2489_v36 }
 0x185   : > { %2492 = vmatprep.subr.bf16.mxu1 %v2491_v37 }
 0x1c5   : > { %v973_v45 = vpop.f32.mrb[0].mxu1 }
 0x1c6   : > { %v974_v46 = vadd.f32 %v3085_v44, %v973_v45  ;;  %v975_v47 = vpop.f32.mrb[1].mxu1  ;;  %v2493_v45 = vpack.c.bf16 %v1474_v39, %v1472_v38 }
 0x1c8   : > { %v1132_v60 = vmax.f32 %v974_v46, 0.0  ;;  %2494 = vmatpush1.bf16.msra.mxu1 %v2493_v45 }
 0x1c9   : > { %v978_v2 = vpop.f32.mrb[2].mxu1  ;;  %2543 = vmatprep.subr.bf16.mxu1 %v2594_v26 }
 0x1ca   : > { %v979_v4 = vadd.f32 %v3085_v44, %v978_v2  ;;  %v980_v5 = vpop.f32.mrb[3].mxu1  ;;  %2319 = vmatprep.mubr.f32.mxu0 %v1132_v60 }
 0x1cc   : > { %v1133_v11 = vmax.f32 %v979_v4, 0.0 }
 0x1cd   : > { %v983_v14 = vpop.f32.mrb[4].mxu1 }
 0x1ce   : > { %v984_v15 = vadd.f32 %v3085_v44, %v983_v14  ;;  %v985_v16 = vpop.f32.mrb[5].mxu1  ;;  %2320 = vmatmul.mubr.f32.vlgmr.msra.gmra.mrb[64].mxu0 %v1133_v11 }
 0x1d0   : > { %v1134_v21 = vmax.f32 %v984_v15, 0.0 }
 0x1d1   : > { %v988_v24 = vpop.f32.mrb[6].mxu1 }
 0x1d2   : > { %v989_v25 = vadd.f32 %v3085_v44, %v988_v24  ;;  %v990_v27 = vpop.f32.mrb[7].mxu1  ;;  %2322 = vmatprep.mubr.f32.mxu0 %v1134_v21 }
 0x1d4   : > { %v1135_v32 = vmax.f32 %v989_v25, 0.0 }
 0x1d5   : > { %v993_v35 = vpop.f32.mrb[8].mxu1 }
 0x1d6   : > { %v994_v55 = vadd.f32 %v3085_v44, %v993_v35  ;;  %v995_v56 = vpop.f32.mrb[9].mxu1  ;;  %2323 = vmatmul.mubr.f32.gmra.mrb[66].mxu0 %v1135_v32 }
 0x1d8   : > { %v1136_v40 = vmax.f32 %v994_v55, 0.0 }
 0x1d9   : > { %v998_v41 = vpop.f32.mrb[10].mxu1 }
 0x1da   : > { %v999_v42 = vadd.f32 %v3085_v44, %v998_v41  ;;  %v1000_v43 = vpop.f32.mrb[11].mxu1  ;;  %2325 = vmatprep.mubr.f32.mxu0 %v1136_v40 }
 0x1dc   : > { %v1137_v46 = vmax.f32 %v999_v42, 0.0 }
 0x1dd   : > { %v1003_v47 = vpop.f32.mrb[12].mxu1 }
 0x1de   : > { %v1004_v48 = vadd.f32 %v3085_v44, %v1003_v47  ;;  %v1005_v49 = vpop.f32.mrb[13].mxu1  ;;  %2326 = vmatmul.mubr.f32.gmra.mrb[68].mxu0 %v1137_v46 }
 0x1e0   : > { %v1138_v51 = vmax.f32 %v1004_v48, 0.0 }
 0x1e1   : > { %v1008_v53 = vpop.f32.mrb[14].mxu1 }
 0x1e2   : > { %v1009_v57 = vadd.f32 %v3085_v44, %v1008_v53  ;;  %v1010_v58 = vpop.f32.mrb[15].mxu1  ;;  %2328 = vmatprep.mubr.f32.mxu0 %v1138_v51 }
 0x1e4   : > { %v1139_v59 = vmax.f32 %v1009_v57, 0.0 }
 0x1e5   : > { %v1013_v60 = vpop.f32.mrb[16].mxu1 }
 0x1e6   : > { %v1014_v61 = vadd.f32 %v3085_v44, %v1013_v60  ;;  %v1015_v62 = vpop.f32.mrb[17].mxu1  ;;  %2329 = vmatmul.mubr.f32.gmra.mrb[70].mxu0 %v1139_v59 }
 0x1e8   : > { %v1140_v63 = vmax.f32 %v1014_v61, 0.0 }
 0x1e9   : > { %v1018_v0 = vpop.f32.mrb[18].mxu1 }
 0x1ea   : > { %v1019_v1 = vadd.f32 %v3085_v44, %v1018_v0  ;;  %v1020_v2 = vpop.f32.mrb[19].mxu1  ;;  %2331 = vmatprep.mubr.f32.mxu0 %v1140_v63 }
 0x1ec   : > { %v1141_v3 = vmax.f32 %v1019_v1, 0.0 }
 0x1ed   : > { %v1023_v4 = vpop.f32.mrb[20].mxu1 }
 0x1ee   : > { %v1024_v5 = vadd.f32 %v3085_v44, %v1023_v4  ;;  %v1025_v6 = vpop.f32.mrb[21].mxu1  ;;  %2332 = vmatmul.mubr.f32.gmra.mrb[72].mxu0 %v1141_v3 }
 0x1f0   : > { %v1142_v8 = vmax.f32 %v1024_v5, 0.0 }
 0x1f1   : > { %v1028_v9 = vpop.f32.mrb[22].mxu1 }
 0x1f2   : > { %v1029_v10 = vadd.f32 %v3085_v44, %v1028_v9  ;;  %v1030_v11 = vpop.f32.mrb[23].mxu1  ;;  %2334 = vmatprep.mubr.f32.mxu0 %v1142_v8 }
 0x1f4   : > { %v1143_v12 = vmax.f32 %v1029_v10, 0.0 }
 0x1f5   : > { %v1033_v13 = vpop.f32.mrb[24].mxu1 }
 0x1f6   : > { %v1034_v14 = vadd.f32 %v3085_v44, %v1033_v13  ;;  %v1035_v15 = vpop.f32.mrb[25].mxu1  ;;  %2335 = vmatmul.mubr.f32.gmra.mrb[74].mxu0 %v1143_v12 }
 0x1f8   : > { %v1144_v16 = vmax.f32 %v1034_v14, 0.0 }
 0x1f9   : > { %v1038_v17 = vpop.f32.mrb[26].mxu1 }
 0x1fa   : > { %v1039_v18 = vadd.f32 %v3085_v44, %v1038_v17  ;;  %v1040_v19 = vpop.f32.mrb[27].mxu1  ;;  %2337 = vmatprep.mubr.f32.mxu0 %v1144_v16 }
 0x1fc   : > { %v1145_v20 = vmax.f32 %v1039_v18, 0.0 }
 0x1fd   : > { %v1043_v21 = vpop.f32.mrb[28].mxu1 }
 0x1fe   : > { %v1044_v22 = vadd.f32 %v3085_v44, %v1043_v21  ;;  %v1045_v23 = vpop.f32.mrb[29].mxu1  ;;  %2338 = vmatmul.mubr.f32.gmra.mrb[76].mxu0 %v1145_v20 }
 0x200   : > { %v1146_v24 = vmax.f32 %v1044_v22, 0.0 }
 0x201   : > { %v1048_v25 = vpop.f32.mrb[30].mxu1 }
 0x202   : > { %v1049_v27 = vadd.f32 %v3085_v44, %v1048_v25  ;;  %v1050_v28 = vpop.f32.mrb[31].mxu1  ;;  %2340 = vmatprep.mubr.f32.mxu0 %v1146_v24 }
 0x204   : > { %v1147_v29 = vmax.f32 %v1049_v27, 0.0 }
 0x205   : > { %v1053_v30 = vpop.f32.mrb[32].mxu1 }
 0x206   : > { %v1054_v31 = vadd.f32 %v3085_v44, %v1053_v30  ;;  %v1055_v32 = vpop.f32.mrb[33].mxu1  ;;  %2341 = vmatmul.mubr.f32.gmra.mrb[78].mxu0 %v1147_v29 }
 0x208   : > { %v1148_v33 = vmax.f32 %v1054_v31, 0.0 }
 0x209   : > { %v1058_v34 = vpop.f32.mrb[34].mxu1 }
 0x20a   : > { %v1059_v35 = vadd.f32 %v3085_v44, %v1058_v34  ;;  %v1060_v55 = vpop.f32.mrb[35].mxu1  ;;  %2343 = vmatprep.mubr.f32.mxu0 %v1148_v33 }
 0x20b   : > { %v3195_v55 = vld [vmem:[%s3578_s6] ss:$0 sm:$0xff] }
 0x20c   : > { %v1149_v56 = vmax.f32 %v1059_v35, 0.0 }
 0x20d   : > { %v1063_v36 = vpop.f32.mrb[36].mxu1 }
 0x20e   : > { %v1064_v37 = vadd.f32 %v3085_v44, %v1063_v36  ;;  %v1065_v38 = vpop.f32.mrb[37].mxu1  ;;  %2344 = vmatmul.mubr.f32.gmra.mrb[80].mxu0 %v1149_v56 }
 0x20f   : > { %v1809_v38 = vld [vmem:[%s3581_s9] sm:$0xff] }
 0x210   : > { %v1150_v39 = vmax.f32 %v1064_v37, 0.0 }
 0x211   : > { %v1068_v40 = vpop.f32.mrb[38].mxu1 }
 0x212   : > { %v1069_v41 = vadd.f32 %v3085_v44, %v1068_v40  ;;  %v1070_v42 = vpop.f32.mrb[39].mxu1  ;;  %2346 = vmatprep.mubr.f32.mxu0 %v1150_v39  ;;  %v1811_v39 = vld [vmem:[%s3581_s9 + $0x10] sm:$0xff] }
 0x214   : > { %v1151_v43 = vmax.f32 %v1069_v41, 0.0  ;;  %v1812_v41 = vld [vmem:[%s3581_s9 + $0x18] sm:$0xff] }
 0x215   : > { %v1073_v45 = vpop.f32.mrb[40].mxu1 }
 0x216   : > { %v1074_v46 = vadd.f32 %v3085_v44, %v1073_v45  ;;  %v1075_v47 = vpop.f32.mrb[41].mxu1  ;;  %2347 = vmatmul.mubr.f32.gmra.mrb[82].mxu0 %v1151_v43  ;;  %v2499_v45 = vpack.c.bf16 %v1812_v41, %v1811_v39 }
 0x217   : > { %v1814_v47 = vld [vmem:[%s3581_s9 + $0x28] sm:$0xff] }
 0x218   : > { %v1152_v48 = vmax.f32 %v1074_v46, 0.0  ;;  %v1813_v46 = vld [vmem:[%s3581_s9 + $0x20] sm:$0xff] }
 0x219   : > { %v1078_v49 = vpop.f32.mrb[42].mxu1 }
 0x21a   : > { %v1079_v51 = vadd.f32 %v3085_v44, %v1078_v49  ;;  %v1080_v53 = vpop.f32.mrb[43].mxu1  ;;  %2349 = vmatprep.mubr.f32.mxu0 %v1152_v48 }
 0x21b   : > { %v2502_v53 = vpack.c.bf16 %v1814_v47, %v1813_v46 }
 0x21c   : > { %v1153_v57 = vmax.f32 %v1079_v51, 0.0 }
 0x21d   : > { %v1083_v58 = vpop.f32.mrb[44].mxu1 }
 0x21e   : > { %v1084_v59 = vadd.f32 %v3085_v44, %v1083_v58  ;;  %v1085_v60 = vpop.f32.mrb[45].mxu1  ;;  %2350 = vmatmul.mubr.f32.gmra.mrb[84].mxu0 %v1153_v57  ;;  %v1815_v58 = vld [vmem:[%s3581_s9 + $0x30] sm:$0xff] }
 0x220   : > { %v1154_v61 = vmax.f32 %v1084_v59, 0.0  ;;  %v1816_v59 = vld [vmem:[%s3581_s9 + $0x38] sm:$0xff] }
 0x221   : > { %v1088_v62 = vpop.f32.mrb[46].mxu1 }
 0x222   : > { %v1089_v63 = vadd.f32 %v3085_v44, %v1088_v62  ;;  %v1090_v0 = vpop.f32.mrb[47].mxu1  ;;  %2352 = vmatprep.mubr.f32.mxu0 %v1154_v61  ;;  %v2505_v62 = vpack.c.bf16 %v1816_v59, %v1815_v58 }
 0x223   : > { %v1818_v0 = vld [vmem:[%s3581_s9 + $0x48] sm:$0xff] }
 0x224   : > { %v1155_v1 = vmax.f32 %v1089_v63, 0.0  ;;  %v1817_v63 = vld [vmem:[%s3581_s9 + $0x40] sm:$0xff] }
 0x225   : > { %v1093_v2 = vpop.f32.mrb[48].mxu1 }
 0x226   : > { %v1094_v3 = vadd.f32 %v3085_v44, %v1093_v2  ;;  %v1095_v4 = vpop.f32.mrb[49].mxu1  ;;  %2353 = vmatmul.mubr.f32.gmra.mrb[86].mxu0 %v1155_v1 }
 0x227   : > { %v2508_v4 = vpack.c.bf16 %v1818_v0, %v1817_v63 }
 0x228   : > { %v1156_v5 = vmax.f32 %v1094_v3, 0.0 }
 0x229   : > { %v1098_v6 = vpop.f32.mrb[50].mxu1 }
 0x22a   : > { %v1099_v8 = vadd.f32 %v3085_v44, %v1098_v6  ;;  %v1100_v9 = vpop.f32.mrb[51].mxu1  ;;  %2355 = vmatprep.mubr.f32.mxu0 %v1156_v5  ;;  %v1819_v6 = vld [vmem:[%s3581_s9 + $0x50] sm:$0xff] }
 0x22c   : > { %v1157_v10 = vmax.f32 %v1099_v8, 0.0  ;;  %v1820_v8 = vld [vmem:[%s3581_s9 + $0x58] sm:$0xff] }
 0x22d   : > { %v1103_v11 = vpop.f32.mrb[52].mxu1 }
 0x22e   : > { %v1104_v12 = vadd.f32 %v3085_v44, %v1103_v11  ;;  %v1105_v13 = vpop.f32.mrb[53].mxu1  ;;  %2356 = vmatmul.mubr.f32.gmra.mrb[88].mxu0 %v1157_v10  ;;  %v2511_v11 = vpack.c.bf16 %v1820_v8, %v1819_v6 }
 0x22f   : > { %v1822_v13 = vld [vmem:[%s3581_s9 + $0x68] sm:$0xff] }
 0x230   : > { %v1158_v14 = vmax.f32 %v1104_v12, 0.0  ;;  %v1821_v12 = vld [vmem:[%s3581_s9 + $0x60] sm:$0xff] }
 0x231   : > { %v1108_v15 = vpop.f32.mrb[54].mxu1 }
 0x232   : > { %v1109_v16 = vadd.f32 %v3085_v44, %v1108_v15  ;;  %v1110_v17 = vpop.f32.mrb[55].mxu1  ;;  %2358 = vmatprep.mubr.f32.mxu0 %v1158_v14 }
 0x233   : > { %v2514_v17 = vpack.c.bf16 %v1822_v13, %v1821_v12 }
 0x234   : > { %v1159_v18 = vmax.f32 %v1109_v16, 0.0 }
 0x235   : > { %v1113_v19 = vpop.f32.mrb[56].mxu1 }
 0x236   : > { %v1114_v20 = vadd.f32 %v3085_v44, %v1113_v19  ;;  %v1115_v21 = vpop.f32.mrb[57].mxu1  ;;  %2359 = vmatmul.mubr.f32.gmra.mrb[90].mxu0 %v1159_v18  ;;  %v1823_v19 = vld [vmem:[%s3581_s9 + $0x70] sm:$0xff] }
 0x238   : > { %v1160_v22 = vmax.f32 %v1114_v20, 0.0  ;;  %v1824_v20 = vld [vmem:[%s3581_s9 + $0x78] sm:$0xff] }
 0x239   : > { %v1118_v23 = vpop.f32.mrb[58].mxu1 }
 0x23a   : > { %v1119_v24 = vadd.f32 %v3085_v44, %v1118_v23  ;;  %v1120_v25 = vpop.f32.mrb[59].mxu1  ;;  %2361 = vmatprep.mubr.f32.mxu0 %v1160_v22  ;;  %v2517_v23 = vpack.c.bf16 %v1824_v20, %v1823_v19 }
 0x23b   : > { %v1826_v25 = vld [vmem:[%s3581_s9 + $0x88] sm:$0xff] }
 0x23c   : > { %v1161_v27 = vmax.f32 %v1119_v24, 0.0  ;;  %v1825_v24 = vld [vmem:[%s3581_s9 + $0x80] sm:$0xff] }
 0x23d   : > { %v1123_v28 = vpop.f32.mrb[60].mxu1 }
 0x23e   : > { %v1124_v29 = vadd.f32 %v3085_v44, %v1123_v28  ;;  %v1125_v30 = vpop.f32.mrb[61].mxu1  ;;  %2362 = vmatmul.mubr.f32.gmra.mrb[92].mxu0 %v1161_v27 }
 0x23f   : > { %v2520_v30 = vpack.c.bf16 %v1826_v25, %v1825_v24 }
 0x240   : > { %v1162_v31 = vmax.f32 %v1124_v29, 0.0 }
 0x241   : > { %v1128_v32 = vpop.f32.mrb[62].mxu1 }
 0x242   : > { %v1129_v33 = vadd.f32 %v3085_v44, %v1128_v32  ;;  %v1130_v34 = vpop.f32.mrb[63].mxu1  ;;  %2364 = vmatprep.mubr.f32.mxu0 %v1162_v31  ;;  %v1810_v44 = vld [vmem:[%s3581_s9 + $0x8] sm:$0xff]  ;;  %v1827_v32 = vld [vmem:[%s3581_s9 + $0x90] sm:$0xff] }
 0x243   : > { %v2496_v40 = vpack.c.bf16 %v1810_v44, %v1809_v38 }
 0x244   : > { %v1163_v35 = vmax.f32 %v1129_v33, 0.0  ;;  %v1828_v33 = vld [vmem:[%s3581_s9 + $0x98] sm:$0xff] }
 0x245   : > { %2497 = vmatpush1.bf16.msra.mxu0 %v2496_v40 }
 0x246   : > { %2365 = vmatmul.mubr.f32.gmra.mrb[94].mxu0 %v1163_v35  ;;  %2498 = vmatprep.subr.bf16.mxu0 %v2594_v26 }
 0x249   : > { %2500 = vmatpush1.bf16.msra.mxu0 %v2499_v45 }
 0x24a   : > { %2501 = vmatprep.subr.bf16.mxu0 %v2594_v26 }
 0x24d   : > { %2503 = vmatpush1.bf16.msra.mxu0 %v2502_v53 }
 0x24e   : > { %2504 = vmatprep.subr.bf16.mxu0 %v2594_v26 }
 0x251   : > { %2506 = vmatpush1.bf16.msra.mxu0 %v2505_v62 }
 0x252   : > { %2507 = vmatprep.subr.bf16.mxu0 %v2594_v26 }
 0x255   : > { %2509 = vmatpush1.bf16.msra.mxu0 %v2508_v4 }
 0x256   : > { %2510 = vmatprep.subr.bf16.mxu0 %v2594_v26 }
 0x259   : > { %2512 = vmatpush1.bf16.msra.mxu0 %v2511_v11 }
 0x25a   : > { %2513 = vmatprep.subr.bf16.mxu0 %v2594_v26 }
 0x25d   : > { %2515 = vmatpush1.bf16.msra.mxu0 %v2514_v17 }
 0x25e   : > { %2516 = vmatprep.subr.bf16.mxu0 %v2594_v26 }
 0x261   : > { %2518 = vmatpush1.bf16.msra.mxu0 %v2517_v23 }
 0x262   : > { %2519 = vmatprep.subr.bf16.mxu0 %v2594_v26 }
 0x265   : > { %2521 = vmatpush1.bf16.msra.mxu0 %v2520_v30 }
 0x266   : > { %2522 = vmatprep.subr.bf16.mxu0 %v2594_v26 }
 0x2a1   : > { %v2321_v56 = vpop.f32.mrb[64].mxu0 }
 0x2a2   : > { %v1253_v36 = vpop.f32.mrb[65].mxu0  ;;  %v1259_v42 = vadd.f32 %v2321_v56, %v3195_v55  ;;  %v2523_v56 = vpack.c.bf16 %v1828_v33, %v1827_v32 }
 0x2a3   : > { %v1254_v37 = vadd.f32 %v3195_v55, %v1253_v36  ;;  %v1829_v36 = vld [vmem:[%s3581_s9 + $0xa0] sm:$0xff] }
 0x2a4   : > { %v1413_v48 = vmax.f32 %v1259_v42, 0.0  ;;  %2524 = vmatpush1.bf16.msra.mxu0 %v2523_v56  ;;  %v1831_v42 = vld [vmem:[%s3581_s9 + $0xb0] sm:$0xff] }
 0x2a5   : > { %v1412_v43 = vmax.f32 %v1254_v37, 0.0  ;;  %v1830_v37 = vld [vmem:[%s3581_s9 + $0xa8] sm:$0xff]  ;;  %2525 = vmatprep.subr.bf16.mxu0 %v2594_v26 }
 0x2a7   : > { %1553 = vmatmul.mubr.f32.vlgmr.msra.gmra.mrb[64].mxu1 %v1412_v43  ;;  %v1832_v43 = vld [vmem:[%s3581_s9 + $0xb8] sm:$0xff] }
 0x2a8   : > { %1558 = vmatprep.mubr.f32.mxu1 %v2593_v7  ;;  %2559 = vmatpush1.bf16.msra.mxu1 %v2496_v40  ;;  %v2526_v40 = vpack.c.bf16 %v1830_v37, %v1829_v36  ;;  %v2529_v47 = vpack.c.bf16 %v1832_v43, %v1831_v42 }
 0x2a9   : > { %v2324_v49 = vpop.f32.mrb[66].mxu0  ;;  %2544 = vmatprep.subr.bf16.mxu1 %v2594_v26 }
 0x2aa   : > { %v1263_v51 = vpop.f32.mrb[67].mxu0  ;;  %v1269_v60 = vadd.f32 %v2324_v49, %v3195_v55  ;;  %2527 = vmatpush1.bf16.msra.mxu0 %v2526_v40  ;;  %v1834_v49 = vld [vmem:[%s3581_s9 + $0xc8] sm:$0xff] }
 0x2ab   : > { %v1264_v57 = vadd.f32 %v3195_v55, %v1263_v51  ;;  %1559 = vmatmul.mubr.f32.gmra.mrb[66].mxu1 %v1413_v48  ;;  %2528 = vmatprep.subr.bf16.mxu0 %v2594_v26  ;;  %v1833_v48 = vld [vmem:[%s3581_s9 + $0xc0] sm:$0xff] }
 0x2ac   : > { %1564 = vmatprep.mubr.f32.mxu1 %v2593_v7  ;;  %2560 = vmatpush1.bf16.msra.mxu1 %v2499_v45  ;;  %v1415_v1 = vmax.f32 %v1269_v60, 0.0  ;;  %v2532_v58 = vpack.c.bf16 %v1834_v49, %v1833_v48  ;;  %v1835_v60 = vld [vmem:[%s3581_s9 + $0xd0] sm:$0xff] }
 0x2ad   : > { %v1414_v61 = vmax.f32 %v1264_v57, 0.0  ;;  %2545 = vmatprep.subr.bf16.mxu1 %v2594_v26 }
 0x2ae   : > { %2530 = vmatpush1.bf16.msra.mxu0 %v2529_v47 }
 0x2af   : > { %1565 = vmatmul.mubr.f32.gmra.mrb[68].mxu1 %v1414_v61  ;;  %2531 = vmatprep.subr.bf16.mxu0 %v2594_v26  ;;  %v1836_v61 = vld [vmem:[%s3581_s9 + $0xd8] sm:$0xff] }
 0x2b0   : > { %1570 = vmatprep.mubr.f32.mxu1 %v2593_v7  ;;  %2561 = vmatpush1.bf16.msra.mxu1 %v2502_v53  ;;  %v2535_v0 = vpack.c.bf16 %v1836_v61, %v1835_v60 }
 0x2b1   : > { %v2327_v2 = vpop.f32.mrb[68].mxu0  ;;  %2546 = vmatprep.subr.bf16.mxu1 %v2594_v26 }
 0x2b2   : > { %v1273_v3 = vpop.f32.mrb[69].mxu0  ;;  %v1279_v9 = vadd.f32 %v2327_v2, %v3195_v55  ;;  %2533 = vmatpush1.bf16.msra.mxu0 %v2532_v58 }
 0x2b3   : > { %v1274_v5 = vadd.f32 %v3195_v55, %v1273_v3  ;;  %1571 = vmatmul.mubr.f32.gmra.mrb[70].mxu1 %v1415_v1  ;;  %2534 = vmatprep.subr.bf16.mxu0 %v2594_v26 }
 0x2b4   : > { %1576 = vmatprep.mubr.f32.mxu1 %v2593_v7  ;;  %2562 = vmatpush1.bf16.msra.mxu1 %v2505_v62  ;;  %v1417_v14 = vmax.f32 %v1279_v9, 0.0 }
 0x2b5   : > { %v1416_v10 = vmax.f32 %v1274_v5, 0.0  ;;  %2547 = vmatprep.subr.bf16.mxu1 %v2594_v26 }
 0x2b6   : > { %2536 = vmatpush1.bf16.msra.mxu0 %v2535_v0 }
 0x2b7   : > { %1577 = vmatmul.mubr.f32.gmra.mrb[72].mxu1 %v1416_v10  ;;  %2537 = vmatprep.subr.bf16.mxu0 %v2594_v26 }
 0x2b8   : > { %1582 = vmatprep.mubr.f32.mxu1 %v2593_v7  ;;  %2563 = vmatpush1.bf16.msra.mxu1 %v2508_v4 }
 0x2b9   : > { %v2330_v15 = vpop.f32.mrb[70].mxu0  ;;  %2548 = vmatprep.subr.bf16.mxu1 %v2594_v26 }
 0x2ba   : > { %v1283_v16 = vpop.f32.mrb[71].mxu0  ;;  %v1289_v21 = vadd.f32 %v2330_v15, %v3195_v55 }
 0x2bb   : > { %v1284_v18 = vadd.f32 %v3195_v55, %v1283_v16  ;;  %1583 = vmatmul.mubr.f32.gmra.mrb[74].mxu1 %v1417_v14 }
 0x2bc   : > { %1588 = vmatprep.mubr.f32.mxu1 %v2593_v7  ;;  %2564 = vmatpush1.bf16.msra.mxu1 %v2511_v11  ;;  %v1419_v27 = vmax.f32 %v1289_v21, 0.0 }
 0x2bd   : > { %v1418_v22 = vmax.f32 %v1284_v18, 0.0  ;;  %2549 = vmatprep.subr.bf16.mxu1 %v2594_v26 }
 0x2bf   : > { %1589 = vmatmul.mubr.f32.gmra.mrb[76].mxu1 %v1418_v22 }
 0x2c0   : > { %1594 = vmatprep.mubr.f32.mxu1 %v2593_v7  ;;  %2565 = vmatpush1.bf16.msra.mxu1 %v2514_v17 }
 0x2c1   : > { %v2333_v28 = vpop.f32.mrb[72].mxu0  ;;  %2550 = vmatprep.subr.bf16.mxu1 %v2594_v26 }
 0x2c2   : > { %v1293_v29 = vpop.f32.mrb[73].mxu0  ;;  %v1299_v34 = vadd.f32 %v2333_v28, %v3195_v55  ;;  %v1838_v28 = vld [vmem:[%s3581_s9 + $0xe8] sm:$0xff] }
 0x2c3   : > { %v1294_v31 = vadd.f32 %v3195_v55, %v1293_v29  ;;  %1595 = vmatmul.mubr.f32.gmra.mrb[78].mxu1 %v1419_v27  ;;  %v1837_v27 = vld [vmem:[%s3581_s9 + $0xe0] sm:$0xff] }
 0x2c4   : > { %1600 = vmatprep.mubr.f32.mxu1 %v2593_v7  ;;  %2566 = vmatpush1.bf16.msra.mxu1 %v2517_v23  ;;  %v1421_v38 = vmax.f32 %v1299_v34, 0.0  ;;  %v2538_v29 = vpack.c.bf16 %v1838_v28, %v1837_v27  ;;  %v1839_v34 = vld [vmem:[%s3581_s9 + $0xf0] sm:$0xff] }
 0x2c5   : > { %v1420_v35 = vmax.f32 %v1294_v31, 0.0  ;;  %2551 = vmatprep.subr.bf16.mxu1 %v2594_v26 }
 0x2c6   : > { %2539 = vmatpush1.bf16.msra.mxu0 %v2538_v29 }
 0x2c7   : > { %1601 = vmatmul.mubr.f32.gmra.mrb[80].mxu1 %v1420_v35  ;;  %2540 = vmatprep.subr.bf16.mxu0 %v2594_v26  ;;  %v1840_v35 = vld [vmem:[%s3581_s9 + $0xf8] sm:$0xff] }
 0x2c8   : > { %1606 = vmatprep.mubr.f32.mxu1 %v2593_v7  ;;  %2567 = vmatpush1.bf16.msra.mxu1 %v2520_v30 }
 0x2c9   : > { %v2336_v44 = vpop.f32.mrb[74].mxu0  ;;  %2552 = vmatprep.subr.bf16.mxu1 %v2594_v26 }
 0x2ca   : > { %v1303_v39 = vpop.f32.mrb[75].mxu0  ;;  %v1309_v45 = vadd.f32 %v2336_v44, %v3195_v55 }
 0x2cb   : > { %v1304_v41 = vadd.f32 %v3195_v55, %v1303_v39  ;;  %1607 = vmatmul.mubr.f32.gmra.mrb[82].mxu1 %v1421_v38 }
 0x2cc   : > { %1612 = vmatprep.mubr.f32.mxu1 %v2593_v7  ;;  %2568 = vmatpush1.bf16.msra.mxu1 %v2523_v56  ;;  %v1423_v51 = vmax.f32 %v1309_v45, 0.0  ;;  %v2541_v56 = vpack.c.bf16 %v1840_v35, %v1839_v34 }
 0x2cd   : > { %v1422_v46 = vmax.f32 %v1304_v41, 0.0  ;;  %2553 = vmatprep.subr.bf16.mxu1 %v2594_v26 }
 0x2ce   : > { %2542 = vmatpush1.bf16.msra.mxu0 %v2541_v56 }
 0x2cf   : > { %1613 = vmatmul.mubr.f32.gmra.mrb[84].mxu1 %v1422_v46 }
 0x2d0   : > { %1618 = vmatprep.mubr.f32.mxu1 %v2593_v7  ;;  %2569 = vmatpush1.bf16.msra.mxu1 %v2526_v40 }
 0x2d1   : > { %v2339_v53 = vpop.f32.mrb[76].mxu0  ;;  %2554 = vmatprep.subr.bf16.mxu1 %v2594_v26 }
 0x2d2   : > { %v1313_v57 = vpop.f32.mrb[77].mxu0  ;;  %v1319_v62 = vadd.f32 %v2339_v53, %v3195_v55 }
 0x2d3   : > { %v1314_v59 = vadd.f32 %v3195_v55, %v1313_v57  ;;  %1619 = vmatmul.mubr.f32.gmra.mrb[86].mxu1 %v1423_v51 }
 0x2d4   : > { %1624 = vmatprep.mubr.f32.mxu1 %v2593_v7  ;;  %2570 = vmatpush1.bf16.msra.mxu1 %v2529_v47  ;;  %v1425_v1 = vmax.f32 %v1319_v62, 0.0 }
 0x2d5   : > { %v1424_v63 = vmax.f32 %v1314_v59, 0.0  ;;  %2555 = vmatprep.subr.bf16.mxu1 %v2594_v26 }
 0x2d7   : > { %1625 = vmatmul.mubr.f32.gmra.mrb[88].mxu1 %v1424_v63 }
 0x2d8   : > { %1630 = vmatprep.mubr.f32.mxu1 %v2593_v7  ;;  %2571 = vmatpush1.bf16.msra.mxu1 %v2532_v58 }
 0x2d9   : > { %v2342_v2 = vpop.f32.mrb[78].mxu0  ;;  %2556 = vmatprep.subr.bf16.mxu1 %v2594_v26 }
 0x2da   : > { %v1323_v3 = vpop.f32.mrb[79].mxu0  ;;  %v1329_v5 = vadd.f32 %v2342_v2, %v3195_v55 }
 0x2db   : > { %v1324_v4 = vadd.f32 %v3195_v55, %v1323_v3  ;;  %1631 = vmatmul.mubr.f32.gmra.mrb[90].mxu1 %v1425_v1  ;;  %v1476_v3 = vld [vmem:[%s3580_s8] sm:$0x3] }
 0x2dc   : > { %1636 = vmatprep.mubr.f32.mxu1 %v2593_v7  ;;  %2572 = vmatpush1.bf16.msra.mxu1 %v2535_v0  ;;  %v1427_v8 = vmax.f32 %v1329_v5, 0.0  ;;  %v3395_v5 = vrot.slane %v1476_v3, %v446_v54 }
 0x2dd   : > { %v1426_v6 = vmax.f32 %v1324_v4, 0.0  ;;  %2557 = vmatprep.subr.bf16.mxu1 %v2594_v26  ;;  %v3391_v4 = vrot.slane %v1476_v3, %v442_v52 }
 0x2df   : > { %1637 = vmatmul.mubr.f32.gmra.mrb[92].mxu1 %v1426_v6 }
 0x2e0   : > { %1642 = vmatprep.mubr.f32.mxu1 %v2593_v7  ;;  %2573 = vmatpush1.bf16.msra.mxu1 %v2538_v29 }
 0x2e1   : > { %v2345_v9 = vpop.f32.mrb[80].mxu0  ;;  %2558 = vmatprep.subr.bf16.mxu1 %v2594_v26 }
 0x2e2   : > { %v1333_v10 = vpop.f32.mrb[81].mxu0  ;;  %v1339_v12 = vadd.f32 %v2345_v9, %v3195_v55 }
 0x2e3   : > { %v1334_v11 = vadd.f32 %v3195_v55, %v1333_v10  ;;  %1643 = vmatmul.mubr.f32.gmra.mrb[94].mxu1 %v1427_v8 }
 0x2e4   : > { %1648 = vmatprep.mubr.f32.mxu1 %v2593_v7  ;;  %v1429_v14 = vmax.f32 %v1339_v12, 0.0  ;;  %2574 = vmatpush1.bf16.msra.mxu1 %v2541_v56 }
 0x2e5   : > { %v1428_v13 = vmax.f32 %v1334_v11, 0.0 }
 0x2e7   : > { %1649 = vmatmul.mubr.f32.gmra.mrb[96].mxu1 %v1428_v13 }
 0x2e8   : > { %1654 = vmatprep.mubr.f32.mxu1 %v2593_v7 }
 0x2e9   : > { %v2348_v15 = vpop.f32.mrb[82].mxu0 }
 0x2ea   : > { %v1343_v16 = vpop.f32.mrb[83].mxu0  ;;  %v1349_v18 = vadd.f32 %v2348_v15, %v3195_v55 }
 0x2eb   : > { %v1344_v17 = vadd.f32 %v3195_v55, %v1343_v16  ;;  %1655 = vmatmul.mubr.f32.gmra.mrb[98].mxu1 %v1429_v14 }
 0x2ec   : > { %1660 = vmatprep.mubr.f32.mxu1 %v2593_v7  ;;  %v1431_v20 = vmax.f32 %v1349_v18, 0.0 }
 0x2ed   : > { %v1430_v19 = vmax.f32 %v1344_v17, 0.0 }
 0x2ef   : > { %1661 = vmatmul.mubr.f32.gmra.mrb[100].mxu1 %v1430_v19 }
 0x2f0   : > { %1666 = vmatprep.mubr.f32.mxu1 %v2593_v7 }
 0x2f1   : > { %v2351_v21 = vpop.f32.mrb[84].mxu0 }
 0x2f2   : > { %v1353_v22 = vpop.f32.mrb[85].mxu0  ;;  %v1359_v24 = vadd.f32 %v2351_v21, %v3195_v55 }
 0x2f3   : > { %v1354_v23 = vadd.f32 %v3195_v55, %v1353_v22  ;;  %1667 = vmatmul.mubr.f32.gmra.mrb[102].mxu1 %v1431_v20 }
 0x2f4   : > { %1672 = vmatprep.mubr.f32.mxu1 %v2593_v7  ;;  %v1433_v30 = vmax.f32 %v1359_v24, 0.0 }
 0x2f5   : > { %v1432_v25 = vmax.f32 %v1354_v23, 0.0 }
 0x2f7   : > { %1673 = vmatmul.mubr.f32.gmra.mrb[104].mxu1 %v1432_v25 }
 0x2f8   : > { %1678 = vmatprep.mubr.f32.mxu1 %v2593_v7 }
 0x2f9   : > { %v2354_v31 = vpop.f32.mrb[86].mxu0 }
 0x2fa   : > { %v1363_v32 = vpop.f32.mrb[87].mxu0  ;;  %v1369_v36 = vadd.f32 %v2354_v31, %v3195_v55 }
 0x2fb   : > { %v1364_v33 = vadd.f32 %v3195_v55, %v1363_v32  ;;  %1679 = vmatmul.mubr.f32.gmra.mrb[106].mxu1 %v1433_v30 }
 0x2fc   : > { %1684 = vmatprep.mubr.f32.mxu1 %v2593_v7  ;;  %v1435_v38 = vmax.f32 %v1369_v36, 0.0 }
 0x2fd   : > { %v1434_v37 = vmax.f32 %v1364_v33, 0.0 }
 0x2ff   : > { %1685 = vmatmul.mubr.f32.gmra.mrb[108].mxu1 %v1434_v37 }
 0x300   : > { %1690 = vmatprep.mubr.f32.mxu1 %v2593_v7 }
 0x301   : > { %v2357_v44 = vpop.f32.mrb[88].mxu0 }
 0x302   : > { %v1373_v39 = vpop.f32.mrb[89].mxu0  ;;  %v1379_v41 = vadd.f32 %v2357_v44, %v3195_v55 }
 0x303   : > { %v1374_v40 = vadd.f32 %v3195_v55, %v1373_v39  ;;  %1691 = vmatmul.mubr.f32.gmra.mrb[110].mxu1 %v1435_v38 }
 0x304   : > { %1696 = vmatprep.mubr.f32.mxu1 %v2593_v7  ;;  %v1437_v26 = vmax.f32 %v1379_v41, 0.0 }
 0x305   : > { %v1436_v42 = vmax.f32 %v1374_v40, 0.0 }
 0x307   : > { %1697 = vmatmul.mubr.f32.gmra.mrb[112].mxu1 %v1436_v42 }
 0x308   : > { %1702 = vmatprep.mubr.f32.mxu1 %v2593_v7 }
 0x309   : > { %v2360_v43 = vpop.f32.mrb[90].mxu0 }
 0x30a   : > { %v1383_v45 = vpop.f32.mrb[91].mxu0  ;;  %v1389_v47 = vadd.f32 %v2360_v43, %v3195_v55 }
 0x30b   : > { %v1384_v46 = vadd.f32 %v3195_v55, %v1383_v45  ;;  %1703 = vmatmul.mubr.f32.gmra.mrb[114].mxu1 %v1437_v26 }
 0x30c   : > { %1708 = vmatprep.mubr.f32.mxu1 %v2593_v7  ;;  %v1439_v49 = vmax.f32 %v1389_v47, 0.0 }
 0x30d   : > { %v1438_v48 = vmax.f32 %v1384_v46, 0.0 }
 0x30f   : > { %1709 = vmatmul.mubr.f32.gmra.mrb[116].mxu1 %v1438_v48 }
 0x310   : > { %1714 = vmatprep.mubr.f32.mxu1 %v2593_v7 }
 0x311   : > { %v2363_v51 = vpop.f32.mrb[92].mxu0 }
 0x312   : > { %v1393_v53 = vpop.f32.mrb[93].mxu0  ;;  %v1399_v58 = vadd.f32 %v2363_v51, %v3195_v55 }
 0x313   : > { %v1394_v57 = vadd.f32 %v3195_v55, %v1393_v53  ;;  %1715 = vmatmul.mubr.f32.gmra.mrb[118].mxu1 %v1439_v49 }
 0x314   : > { %1720 = vmatprep.mubr.f32.mxu1 %v2593_v7  ;;  %v1441_v60 = vmax.f32 %v1399_v58, 0.0 }
 0x315   : > { %v1440_v59 = vmax.f32 %v1394_v57, 0.0 }
 0x317   : > { %1721 = vmatmul.mubr.f32.gmra.mrb[120].mxu1 %v1440_v59 }
 0x318   : > { %1726 = vmatprep.mubr.f32.mxu1 %v2593_v7 }
 0x319   : > { %v2366_v61 = vpop.f32.mrb[94].mxu0 }
 0x31a   : > { %v1403_v62 = vpop.f32.mrb[95].mxu0  ;;  %v1409_v0 = vadd.f32 %v2366_v61, %v3195_v55 }
 0x31b   : > { %v1404_v63 = vadd.f32 %v3195_v55, %v1403_v62  ;;  %1727 = vmatmul.mubr.f32.gmra.mrb[122].mxu1 %v1441_v60 }
 0x31c   : > { %1732 = vmatprep.mubr.f32.mxu1 %v2593_v7  ;;  %v1443_v2 = vmax.f32 %v1409_v0, 0.0 }
 0x31d   : > { %v1442_v1 = vmax.f32 %v1404_v63, 0.0 }
 0x31f   : > { %1733 = vmatmul.mubr.f32.gmra.mrb[124].mxu1 %v1442_v1 }
 0x320   : > { %1738 = vmatprep.mubr.f32.mxu1 %v2593_v7 }
 0x323   : > { %1739 = vmatmul.mubr.f32.gmra.mrb[126].mxu1 %v1443_v2 }
 0x37a   : > { %v1554_v6 = vpop.f32.mrb[64].mxu1 }
 0x37b   : > { %v1555_v55 = vadd.f32 %v1554_v6, %v3391_v4  ;;  %v1556_v8 = vpop.f32.mrb[65].mxu1 }
 0x37c   : > { %v1557_v7 = vadd.f32 %v1556_v8, %v3395_v5 }
 0x37d   : > { %v1745_v11 = vmax.f32 %v1555_v55, 0.0 }
 0x37e   : > { %v1746_v9 = vmax.f32 %v1557_v7, 0.0  ;;  %v1560_v10 = vpop.f32.mrb[66].mxu1 }
 0x37f   : > { %v1561_v12 = vadd.f32 %v1560_v10, %v3391_v4  ;;  %v1562_v13 = vpop.f32.mrb[67].mxu1 }
 0x380   : > { %v1563_v14 = vadd.f32 %v1562_v13, %v3395_v5  ;;  %1912 = vmatprep.mubr.f32.mxu0 %v1746_v9 }
 0x381   : > { %1913 = vmatmul.mubr.f32.vlgmr.msra.gmra.mrb[96].mxu0 %v1745_v11  ;;  %v1747_v54 = vmax.f32 %v1561_v12, 0.0 }
 0x382   : > { %v1748_v52 = vmax.f32 %v1563_v14, 0.0  ;;  %v1566_v50 = vpop.f32.mrb[68].mxu1 }
 0x383   : > { %v1567_v15 = vadd.f32 %v1566_v50, %v3391_v4  ;;  %v1568_v16 = vpop.f32.mrb[69].mxu1 }
 0x384   : > { %v1569_v17 = vadd.f32 %v1568_v16, %v3395_v5  ;;  %1917 = vmatprep.mubr.f32.mxu0 %v1748_v52 }
 0x385   : > { %1918 = vmatmul.mubr.f32.gmra.mrb[98].mxu0 %v1747_v54  ;;  %v1749_v20 = vmax.f32 %v1567_v15, 0.0 }
 0x386   : > { %v1750_v18 = vmax.f32 %v1569_v17, 0.0  ;;  %v1572_v19 = vpop.f32.mrb[70].mxu1 }
 0x387   : > { %v1573_v21 = vadd.f32 %v1572_v19, %v3391_v4  ;;  %v1574_v22 = vpop.f32.mrb[71].mxu1 }
 0x388   : > { %v1575_v23 = vadd.f32 %v1574_v22, %v3395_v5  ;;  %1922 = vmatprep.mubr.f32.mxu0 %v1750_v18 }
 0x389   : > { %1923 = vmatmul.mubr.f32.gmra.mrb[100].mxu0 %v1749_v20  ;;  %v1751_v27 = vmax.f32 %v1573_v21, 0.0 }
 0x38a   : > { %v1752_v24 = vmax.f32 %v1575_v23, 0.0  ;;  %v1578_v25 = vpop.f32.mrb[72].mxu1 }
 0x38b   : > { %v1579_v28 = vadd.f32 %v1578_v25, %v3391_v4  ;;  %v1580_v29 = vpop.f32.mrb[73].mxu1 }
 0x38c   : > { %v1581_v30 = vadd.f32 %v1580_v29, %v3395_v5  ;;  %1927 = vmatprep.mubr.f32.mxu0 %v1752_v24 }
 0x38d   : > { %1928 = vmatmul.mubr.f32.gmra.mrb[102].mxu0 %v1751_v27  ;;  %v1753_v33 = vmax.f32 %v1579_v28, 0.0 }
 0x38e   : > { %v1754_v31 = vmax.f32 %v1581_v30, 0.0  ;;  %v1584_v32 = vpop.f32.mrb[74].mxu1 }
 0x38f   : > { %v1585_v34 = vadd.f32 %v1584_v32, %v3391_v4  ;;  %v1586_v35 = vpop.f32.mrb[75].mxu1 }
 0x390   : > { %v1587_v56 = vadd.f32 %v1586_v35, %v3395_v5  ;;  %1932 = vmatprep.mubr.f32.mxu0 %v1754_v31 }
 0x391   : > { %1933 = vmatmul.mubr.f32.gmra.mrb[104].mxu0 %v1753_v33  ;;  %v1755_v38 = vmax.f32 %v1585_v34, 0.0 }
 0x392   : > { %v1756_v36 = vmax.f32 %v1587_v56, 0.0  ;;  %v1590_v37 = vpop.f32.mrb[76].mxu1 }
 0x393   : > { %v1591_v44 = vadd.f32 %v1590_v37, %v3391_v4  ;;  %v1592_v39 = vpop.f32.mrb[77].mxu1 }
 0x394   : > { %v1593_v40 = vadd.f32 %v1592_v39, %v3395_v5  ;;  %1937 = vmatprep.mubr.f32.mxu0 %v1756_v36 }
 0x395   : > { %1938 = vmatmul.mubr.f32.gmra.mrb[106].mxu0 %v1755_v38  ;;  %v1757_v26 = vmax.f32 %v1591_v44, 0.0 }
 0x396   : > { %v1758_v41 = vmax.f32 %v1593_v40, 0.0  ;;  %v1596_v42 = vpop.f32.mrb[78].mxu1 }
 0x397   : > { %v1597_v43 = vadd.f32 %v1596_v42, %v3391_v4  ;;  %v1598_v45 = vpop.f32.mrb[79].mxu1 }
 0x398   : > { %v1599_v46 = vadd.f32 %v1598_v45, %v3395_v5  ;;  %1942 = vmatprep.mubr.f32.mxu0 %v1758_v41 }
 0x399   : > { %1943 = vmatmul.mubr.f32.gmra.mrb[108].mxu0 %v1757_v26  ;;  %v1759_v49 = vmax.f32 %v1597_v43, 0.0 }
 0x39a   : > { %v1760_v47 = vmax.f32 %v1599_v46, 0.0  ;;  %v1602_v48 = vpop.f32.mrb[80].mxu1 }
 0x39b   : > { %v1603_v51 = vadd.f32 %v1602_v48, %v3391_v4  ;;  %v1604_v53 = vpop.f32.mrb[81].mxu1 }
 0x39c   : > { %v1605_v57 = vadd.f32 %v1604_v53, %v3395_v5  ;;  %1947 = vmatprep.mubr.f32.mxu0 %v1760_v47 }
 0x39d   : > { %1948 = vmatmul.mubr.f32.gmra.mrb[110].mxu0 %v1759_v49  ;;  %v1761_v60 = vmax.f32 %v1603_v51, 0.0 }
 0x39e   : > { %v1762_v58 = vmax.f32 %v1605_v57, 0.0  ;;  %v1608_v59 = vpop.f32.mrb[82].mxu1 }
 0x39f   : > { %v1609_v61 = vadd.f32 %v1608_v59, %v3391_v4  ;;  %v1610_v62 = vpop.f32.mrb[83].mxu1 }
 0x3a0   : > { %v1611_v63 = vadd.f32 %v1610_v62, %v3395_v5  ;;  %1952 = vmatprep.mubr.f32.mxu0 %v1762_v58 }
 0x3a1   : > { %1953 = vmatmul.mubr.f32.gmra.mrb[112].mxu0 %v1761_v60  ;;  %v1763_v2 = vmax.f32 %v1609_v61, 0.0 }
 0x3a2   : > { %v1764_v0 = vmax.f32 %v1611_v63, 0.0  ;;  %v1614_v1 = vpop.f32.mrb[84].mxu1 }
 0x3a3   : > { %v1615_v3 = vadd.f32 %v1614_v1, %v3391_v4  ;;  %v1616_v6 = vpop.f32.mrb[85].mxu1 }
 0x3a4   : > { %v1617_v55 = vadd.f32 %v1616_v6, %v3395_v5  ;;  %1957 = vmatprep.mubr.f32.mxu0 %v1764_v0 }
 0x3a5   : > { %1958 = vmatmul.mubr.f32.gmra.mrb[114].mxu0 %v1763_v2  ;;  %v1765_v9 = vmax.f32 %v1615_v3, 0.0 }
 0x3a6   : > { %v1766_v8 = vmax.f32 %v1617_v55, 0.0  ;;  %v1620_v7 = vpop.f32.mrb[86].mxu1 }
 0x3a7   : > { %v1621_v10 = vadd.f32 %v1620_v7, %v3391_v4  ;;  %v1622_v11 = vpop.f32.mrb[87].mxu1 }
 0x3a8   : > { %v1623_v12 = vadd.f32 %v1622_v11, %v3395_v5  ;;  %1962 = vmatprep.mubr.f32.mxu0 %v1766_v8 }
 0x3a9   : > { %1963 = vmatmul.mubr.f32.gmra.mrb[116].mxu0 %v1765_v9  ;;  %v1767_v52 = vmax.f32 %v1621_v10, 0.0 }
 0x3aa   : > { %v1768_v13 = vmax.f32 %v1623_v12, 0.0  ;;  %v1626_v14 = vpop.f32.mrb[88].mxu1 }
 0x3ab   : > { %v1627_v50 = vadd.f32 %v1626_v14, %v3391_v4  ;;  %v1628_v54 = vpop.f32.mrb[89].mxu1 }
 0x3ac   : > { %v1629_v15 = vadd.f32 %v1628_v54, %v3395_v5  ;;  %1967 = vmatprep.mubr.f32.mxu0 %v1768_v13 }
 0x3ad   : > { %1968 = vmatmul.mubr.f32.gmra.mrb[118].mxu0 %v1767_v52  ;;  %v1769_v18 = vmax.f32 %v1627_v50, 0.0 }
 0x3ae   : > { %v1770_v16 = vmax.f32 %v1629_v15, 0.0  ;;  %v1632_v17 = vpop.f32.mrb[90].mxu1 }
 0x3af   : > { %v1633_v19 = vadd.f32 %v1632_v17, %v3391_v4  ;;  %v1634_v20 = vpop.f32.mrb[91].mxu1 }
 0x3b0   : > { %v1635_v21 = vadd.f32 %v1634_v20, %v3395_v5  ;;  %1972 = vmatprep.mubr.f32.mxu0 %v1770_v16 }
 0x3b1   : > { %1973 = vmatmul.mubr.f32.gmra.mrb[120].mxu0 %v1769_v18  ;;  %v1771_v24 = vmax.f32 %v1633_v19, 0.0 }
 0x3b2   : > { %v1772_v22 = vmax.f32 %v1635_v21, 0.0  ;;  %v1638_v23 = vpop.f32.mrb[92].mxu1 }
 0x3b3   : > { %v1639_v25 = vadd.f32 %v1638_v23, %v3391_v4  ;;  %v1640_v27 = vpop.f32.mrb[93].mxu1 }
 0x3b4   : > { %v1641_v28 = vadd.f32 %v1640_v27, %v3395_v5  ;;  %1977 = vmatprep.mubr.f32.mxu0 %v1772_v22 }
 0x3b5   : > { %1978 = vmatmul.mubr.f32.gmra.mrb[122].mxu0 %v1771_v24  ;;  %v1773_v31 = vmax.f32 %v1639_v25, 0.0 }
 0x3b6   : > { %v1774_v29 = vmax.f32 %v1641_v28, 0.0  ;;  %v1644_v30 = vpop.f32.mrb[94].mxu1 }
 0x3b7   : > { %v1645_v32 = vadd.f32 %v1644_v30, %v3391_v4  ;;  %v1646_v33 = vpop.f32.mrb[95].mxu1 }
 0x3b8   : > { %v1647_v34 = vadd.f32 %v1646_v33, %v3395_v5  ;;  %1982 = vmatprep.mubr.f32.mxu0 %v1774_v29 }
 0x3b9   : > { %1983 = vmatmul.mubr.f32.gmra.mrb[124].mxu0 %v1773_v31  ;;  %v1775_v36 = vmax.f32 %v1645_v32, 0.0 }
 0x3ba   : > { %v1776_v35 = vmax.f32 %v1647_v34, 0.0  ;;  %v1650_v56 = vpop.f32.mrb[96].mxu1 }
 0x3bb   : > { %v1651_v37 = vadd.f32 %v1650_v56, %v3391_v4  ;;  %v1652_v38 = vpop.f32.mrb[97].mxu1 }
 0x3bc   : > { %v1653_v44 = vadd.f32 %v1652_v38, %v3395_v5  ;;  %1987 = vmatprep.mubr.f32.mxu0 %v1776_v35 }
 0x3bd   : > { %1988 = vmatmul.mubr.f32.gmra.mrb[126].mxu0 %v1775_v36  ;;  %v1777_v41 = vmax.f32 %v1651_v37, 0.0 }
 0x3be   : > { %v1778_v39 = vmax.f32 %v1653_v44, 0.0  ;;  %v1656_v40 = vpop.f32.mrb[98].mxu1 }
 0x3bf   : > { %v1657_v42 = vadd.f32 %v1656_v40, %v3391_v4  ;;  %v1658_v26 = vpop.f32.mrb[99].mxu1 }
 0x3c0   : > { %v1659_v43 = vadd.f32 %v1658_v26, %v3395_v5  ;;  %1992 = vmatprep.mubr.f32.mxu0 %v1778_v39 }
 0x3c1   : > { %1993 = vmatmul.mubr.f32.gmra.mrb[128].mxu0 %v1777_v41  ;;  %v1779_v47 = vmax.f32 %v1657_v42, 0.0 }
 0x3c2   : > { %v1780_v45 = vmax.f32 %v1659_v43, 0.0  ;;  %v1662_v46 = vpop.f32.mrb[100].mxu1 }
 0x3c3   : > { %v1663_v48 = vadd.f32 %v1662_v46, %v3391_v4  ;;  %v1664_v49 = vpop.f32.mrb[101].mxu1 }
 0x3c4   : > { %v1665_v51 = vadd.f32 %v1664_v49, %v3395_v5  ;;  %1997 = vmatprep.mubr.f32.mxu0 %v1780_v45 }
 0x3c5   : > { %1998 = vmatmul.mubr.f32.gmra.mrb[130].mxu0 %v1779_v47  ;;  %v1781_v58 = vmax.f32 %v1663_v48, 0.0 }
 0x3c6   : > { %v1782_v53 = vmax.f32 %v1665_v51, 0.0  ;;  %v1668_v57 = vpop.f32.mrb[102].mxu1 }
 0x3c7   : > { %v1669_v59 = vadd.f32 %v1668_v57, %v3391_v4  ;;  %v1670_v60 = vpop.f32.mrb[103].mxu1 }
 0x3c8   : > { %v1671_v61 = vadd.f32 %v1670_v60, %v3395_v5  ;;  %2002 = vmatprep.mubr.f32.mxu0 %v1782_v53 }
 0x3c9   : > { %2003 = vmatmul.mubr.f32.gmra.mrb[132].mxu0 %v1781_v58  ;;  %v1783_v0 = vmax.f32 %v1669_v59, 0.0 }
 0x3ca   : > { %v1784_v62 = vmax.f32 %v1671_v61, 0.0  ;;  %v1674_v63 = vpop.f32.mrb[104].mxu1 }
 0x3cb   : > { %v1675_v1 = vadd.f32 %v1674_v63, %v3391_v4  ;;  %v1676_v2 = vpop.f32.mrb[105].mxu1 }
 0x3cc   : > { %v1677_v3 = vadd.f32 %v1676_v2, %v3395_v5  ;;  %2007 = vmatprep.mubr.f32.mxu0 %v1784_v62 }
 0x3cd   : > { %2008 = vmatmul.mubr.f32.gmra.mrb[134].mxu0 %v1783_v0  ;;  %v1785_v8 = vmax.f32 %v1675_v1, 0.0 }
 0x3ce   : > { %v1786_v6 = vmax.f32 %v1677_v3, 0.0  ;;  %v1680_v55 = vpop.f32.mrb[106].mxu1 }
 0x3cf   : > { %v1681_v7 = vadd.f32 %v1680_v55, %v3391_v4  ;;  %v1682_v9 = vpop.f32.mrb[107].mxu1 }
 0x3d0   : > { %v1683_v10 = vadd.f32 %v1682_v9, %v3395_v5  ;;  %2012 = vmatprep.mubr.f32.mxu0 %v1786_v6 }
 0x3d1   : > { %2013 = vmatmul.mubr.f32.gmra.mrb[136].mxu0 %v1785_v8  ;;  %v1787_v13 = vmax.f32 %v1681_v7, 0.0 }
 0x3d2   : > { %v1788_v11 = vmax.f32 %v1683_v10, 0.0  ;;  %v1686_v12 = vpop.f32.mrb[108].mxu1 }
 0x3d3   : > { %v1687_v14 = vadd.f32 %v1686_v12, %v3391_v4  ;;  %v1688_v52 = vpop.f32.mrb[109].mxu1 }
 0x3d4   : > { %v1689_v50 = vadd.f32 %v1688_v52, %v3395_v5  ;;  %2017 = vmatprep.mubr.f32.mxu0 %v1788_v11  ;;  %v3464_v11 = vld [vmem:[%s3582_s10] ss:$0 sm:$0xff] }
 0x3d5   : > { %2018 = vmatmul.mubr.f32.gmra.mrb[138].mxu0 %v1787_v13  ;;  %v1789_v16 = vmax.f32 %v1687_v14, 0.0 }
 0x3d6   : > { %v1790_v54 = vmax.f32 %v1689_v50, 0.0  ;;  %v1692_v15 = vpop.f32.mrb[110].mxu1 }
 0x3d7   : > { %v1693_v17 = vadd.f32 %v1692_v15, %v3391_v4  ;;  %v1694_v18 = vpop.f32.mrb[111].mxu1 }
 0x3d8   : > { %v1695_v19 = vadd.f32 %v1694_v18, %v3395_v5  ;;  %2022 = vmatprep.mubr.f32.mxu0 %v1790_v54 }
 0x3d9   : > { %2023 = vmatmul.mubr.f32.gmra.mrb[140].mxu0 %v1789_v16  ;;  %v1791_v22 = vmax.f32 %v1693_v17, 0.0 }
 0x3da   : > { %v1792_v20 = vmax.f32 %v1695_v19, 0.0  ;;  %v1698_v21 = vpop.f32.mrb[112].mxu1 }
 0x3db   : > { %v1699_v23 = vadd.f32 %v1698_v21, %v3391_v4  ;;  %v1700_v24 = vpop.f32.mrb[113].mxu1 }
 0x3dc   : > { %v1701_v25 = vadd.f32 %v1700_v24, %v3395_v5  ;;  %2027 = vmatprep.mubr.f32.mxu0 %v1792_v20 }
 0x3dd   : > { %2028 = vmatmul.mubr.f32.gmra.mrb[142].mxu0 %v1791_v22  ;;  %v1793_v29 = vmax.f32 %v1699_v23, 0.0 }
 0x3de   : > { %v1794_v27 = vmax.f32 %v1701_v25, 0.0  ;;  %v1704_v28 = vpop.f32.mrb[114].mxu1 }
 0x3df   : > { %v1705_v30 = vadd.f32 %v1704_v28, %v3391_v4  ;;  %v1706_v31 = vpop.f32.mrb[115].mxu1 }
 0x3e0   : > { %v1707_v32 = vadd.f32 %v1706_v31, %v3395_v5  ;;  %2032 = vmatprep.mubr.f32.mxu0 %v1794_v27 }
 0x3e1   : > { %2033 = vmatmul.mubr.f32.gmra.mrb[144].mxu0 %v1793_v29  ;;  %v1795_v35 = vmax.f32 %v1705_v30, 0.0 }
 0x3e2   : > { %v1796_v33 = vmax.f32 %v1707_v32, 0.0  ;;  %v1710_v34 = vpop.f32.mrb[116].mxu1 }
 0x3e3   : > { %v1711_v56 = vadd.f32 %v1710_v34, %v3391_v4  ;;  %v1712_v36 = vpop.f32.mrb[117].mxu1 }
 0x3e4   : > { %v1713_v37 = vadd.f32 %v1712_v36, %v3395_v5  ;;  %2037 = vmatprep.mubr.f32.mxu0 %v1796_v33 }
 0x3e5   : > { %2038 = vmatmul.mubr.f32.gmra.mrb[146].mxu0 %v1795_v35  ;;  %v1797_v39 = vmax.f32 %v1711_v56, 0.0 }
 0x3e6   : > { %v1798_v38 = vmax.f32 %v1713_v37, 0.0  ;;  %v1716_v44 = vpop.f32.mrb[118].mxu1 }
 0x3e7   : > { %v1717_v40 = vadd.f32 %v1716_v44, %v3391_v4  ;;  %v1718_v41 = vpop.f32.mrb[119].mxu1 }
 0x3e8   : > { %v1719_v42 = vadd.f32 %v1718_v41, %v3395_v5  ;;  %2042 = vmatprep.mubr.f32.mxu0 %v1798_v38 }
 0x3e9   : > { %2043 = vmatmul.mubr.f32.gmra.mrb[148].mxu0 %v1797_v39  ;;  %v1799_v45 = vmax.f32 %v1717_v40, 0.0 }
 0x3ea   : > { %v1800_v26 = vmax.f32 %v1719_v42, 0.0  ;;  %v1722_v43 = vpop.f32.mrb[120].mxu1 }
 0x3eb   : > { %v1723_v46 = vadd.f32 %v1722_v43, %v3391_v4  ;;  %v1724_v47 = vpop.f32.mrb[121].mxu1 }
 0x3ec   : > { %v1725_v48 = vadd.f32 %v1724_v47, %v3395_v5  ;;  %2047 = vmatprep.mubr.f32.mxu0 %v1800_v26 }
 0x3ed   : > { %2048 = vmatmul.mubr.f32.gmra.mrb[150].mxu0 %v1799_v45  ;;  %v1801_v53 = vmax.f32 %v1723_v46, 0.0 }
 0x3ee   : > { %v1802_v49 = vmax.f32 %v1725_v48, 0.0  ;;  %v1728_v51 = vpop.f32.mrb[122].mxu1 }
 0x3ef   : > { %v1729_v57 = vadd.f32 %v1728_v51, %v3391_v4  ;;  %v1730_v58 = vpop.f32.mrb[123].mxu1 }
 0x3f0   : > { %v1731_v59 = vadd.f32 %v1730_v58, %v3395_v5  ;;  %2052 = vmatprep.mubr.f32.mxu0 %v1802_v49 }
 0x3f1   : > { %2053 = vmatmul.mubr.f32.gmra.mrb[152].mxu0 %v1801_v53  ;;  %v1803_v62 = vmax.f32 %v1729_v57, 0.0 }
 0x3f2   : > { %v1804_v60 = vmax.f32 %v1731_v59, 0.0  ;;  %v1734_v61 = vpop.f32.mrb[124].mxu1 }
 0x3f3   : > { %v1735_v63 = vadd.f32 %v1734_v61, %v3391_v4  ;;  %v1736_v0 = vpop.f32.mrb[125].mxu1 }
 0x3f4   : > { %v1737_v1 = vadd.f32 %v1736_v0, %v3395_v5  ;;  %2057 = vmatprep.mubr.f32.mxu0 %v1804_v60 }
 0x3f5   : > { %2058 = vmatmul.mubr.f32.gmra.mrb[154].mxu0 %v1803_v62  ;;  %v1805_v6 = vmax.f32 %v1735_v63, 0.0 }
 0x3f6   : > { %v1806_v2 = vmax.f32 %v1737_v1, 0.0  ;;  %v1740_v3 = vpop.f32.mrb[126].mxu1 }
 0x3f7   : > { %v1741_v55 = vadd.f32 %v1740_v3, %v3391_v4  ;;  %v1742_v8 = vpop.f32.mrb[127].mxu1 }
 0x3f8   : > { %v1743_v7 = vadd.f32 %v1742_v8, %v3395_v5  ;;  %2062 = vmatprep.mubr.f32.mxu1 %v1806_v2 }
 0x3f9   : > { %2063 = vmatmul.mubr.f32.vlgmr.msra.gmra.mrb[128].mxu1 %v1805_v6  ;;  %v1807_v10 = vmax.f32 %v1741_v55, 0.0 }
 0x3fa   : > { %v1808_v9 = vmax.f32 %v1743_v7, 0.0 }
 0x3fc   : > { %2067 = vmatprep.mubr.f32.mxu1 %v1808_v9 }
 0x3fd   : > { %2068 = vmatmul.mubr.f32.gmra.mrb[130].mxu1 %v1807_v10 }
 0x454   : > { %v1914_v12 = vpop.f32.mrb[96].mxu0 }
 0x455   : > { %v1915_v13 = vadd.f32 %v3464_v11, %v1914_v12  ;;  %v1916_v14 = vpop.f32.mrb[97].mxu0 }
 0x457   : > { %v2073_v4 = vmax.f32 %v1915_v13, 0.0 }
 0x458   : > { %v1919_v5 = vpop.f32.mrb[98].mxu0 }
 0x459   : > { %2105 = vst.msk [vmem:[%s3472_s21] sm:$0xff] %vm450_vm0, %v2073_v4  ;;  %v1920_v52 = vadd.f32 %v3464_v11, %v1919_v5  ;;  %v1921_v50 = vpop.f32.mrb[99].mxu0 }
 0x45b   : > { %v2074_v54 = vmax.f32 %v1920_v52, 0.0 }
 0x45c   : > { %v1924_v15 = vpop.f32.mrb[100].mxu0 }
 0x45d   : > { %2106 = vst.msk [vmem:[%s3472_s21 + $0x8] sm:$0xff] %vm450_vm0, %v2074_v54  ;;  %v1925_v16 = vadd.f32 %v3464_v11, %v1924_v15  ;;  %v1926_v17 = vpop.f32.mrb[101].mxu0 }
 0x45f   : > { %v2075_v18 = vmax.f32 %v1925_v16, 0.0 }
 0x460   : > { %v1929_v19 = vpop.f32.mrb[102].mxu0 }
 0x461   : > { %2107 = vst.msk [vmem:[%s3472_s21 + $0x10] sm:$0xff] %vm450_vm0, %v2075_v18  ;;  %v1930_v20 = vadd.f32 %v3464_v11, %v1929_v19  ;;  %v1931_v21 = vpop.f32.mrb[103].mxu0 }
 0x463   : > { %v2076_v22 = vmax.f32 %v1930_v20, 0.0 }
 0x464   : > { %v1934_v23 = vpop.f32.mrb[104].mxu0 }
 0x465   : > { %2108 = vst.msk [vmem:[%s3472_s21 + $0x18] sm:$0xff] %vm450_vm0, %v2076_v22  ;;  %v1935_v24 = vadd.f32 %v3464_v11, %v1934_v23  ;;  %v1936_v25 = vpop.f32.mrb[105].mxu0 }
 0x467   : > { %v2077_v27 = vmax.f32 %v1935_v24, 0.0 }
 0x468   : > { %v1939_v28 = vpop.f32.mrb[106].mxu0 }
 0x469   : > { %2109 = vst.msk [vmem:[%s3472_s21 + $0x20] sm:$0xff] %vm450_vm0, %v2077_v27  ;;  %v1940_v29 = vadd.f32 %v3464_v11, %v1939_v28  ;;  %v1941_v30 = vpop.f32.mrb[107].mxu0 }
 0x46b   : > { %v2078_v31 = vmax.f32 %v1940_v29, 0.0 }
 0x46c   : > { %v1944_v32 = vpop.f32.mrb[108].mxu0 }
 0x46d   : > { %2110 = vst.msk [vmem:[%s3472_s21 + $0x28] sm:$0xff] %vm450_vm0, %v2078_v31  ;;  %v1945_v33 = vadd.f32 %v3464_v11, %v1944_v32  ;;  %v1946_v34 = vpop.f32.mrb[109].mxu0 }
 0x46f   : > { %v2079_v35 = vmax.f32 %v1945_v33, 0.0 }
 0x470   : > { %v1949_v56 = vpop.f32.mrb[110].mxu0 }
 0x471   : > { %2111 = vst.msk [vmem:[%s3472_s21 + $0x30] sm:$0xff] %vm450_vm0, %v2079_v35  ;;  %v1950_v36 = vadd.f32 %v3464_v11, %v1949_v56  ;;  %v1951_v37 = vpop.f32.mrb[111].mxu0 }
 0x473   : > { %v2080_v38 = vmax.f32 %v1950_v36, 0.0 }
 0x474   : > { %v1954_v44 = vpop.f32.mrb[112].mxu0 }
 0x475   : > { %2112 = vst.msk [vmem:[%s3472_s21 + $0x38] sm:$0xff] %vm450_vm0, %v2080_v38  ;;  %v1955_v39 = vadd.f32 %v3464_v11, %v1954_v44  ;;  %v1956_v40 = vpop.f32.mrb[113].mxu0 }
 0x477   : > { %v2081_v41 = vmax.f32 %v1955_v39, 0.0 }
 0x478   : > { %v1959_v42 = vpop.f32.mrb[114].mxu0 }
 0x479   : > { %2113 = vst.msk [vmem:[%s3472_s21 + $0x40] sm:$0xff] %vm450_vm0, %v2081_v41  ;;  %v1960_v26 = vadd.f32 %v3464_v11, %v1959_v42  ;;  %v1961_v43 = vpop.f32.mrb[115].mxu0 }
 0x47b   : > { %v2082_v45 = vmax.f32 %v1960_v26, 0.0 }
 0x47c   : > { %v1964_v46 = vpop.f32.mrb[116].mxu0 }
 0x47d   : > { %2114 = vst.msk [vmem:[%s3472_s21 + $0x48] sm:$0xff] %vm450_vm0, %v2082_v45  ;;  %v1965_v47 = vadd.f32 %v3464_v11, %v1964_v46  ;;  %v1966_v48 = vpop.f32.mrb[117].mxu0 }
 0x47f   : > { %v2083_v49 = vmax.f32 %v1965_v47, 0.0 }
 0x480   : > { %v1969_v51 = vpop.f32.mrb[118].mxu0 }
 0x481   : > { %2115 = vst.msk [vmem:[%s3472_s21 + $0x50] sm:$0xff] %vm450_vm0, %v2083_v49  ;;  %v1970_v53 = vadd.f32 %v3464_v11, %v1969_v51  ;;  %v1971_v57 = vpop.f32.mrb[119].mxu0 }
 0x483   : > { %v2084_v58 = vmax.f32 %v1970_v53, 0.0 }
 0x484   : > { %v1974_v59 = vpop.f32.mrb[120].mxu0 }
 0x485   : > { %2116 = vst.msk [vmem:[%s3472_s21 + $0x58] sm:$0xff] %vm450_vm0, %v2084_v58  ;;  %v1975_v60 = vadd.f32 %v3464_v11, %v1974_v59  ;;  %v1976_v61 = vpop.f32.mrb[121].mxu0 }
 0x487   : > { %v2085_v62 = vmax.f32 %v1975_v60, 0.0 }
 0x488   : > { %v1979_v63 = vpop.f32.mrb[122].mxu0 }
 0x489   : > { %2117 = vst.msk [vmem:[%s3472_s21 + $0x60] sm:$0xff] %vm450_vm0, %v2085_v62  ;;  %v1980_v0 = vadd.f32 %v3464_v11, %v1979_v63  ;;  %v1981_v1 = vpop.f32.mrb[123].mxu0 }
 0x48b   : > { %v2086_v2 = vmax.f32 %v1980_v0, 0.0 }
 0x48c   : > { %v1984_v3 = vpop.f32.mrb[124].mxu0 }
 0x48d   : > { %2118 = vst.msk [vmem:[%s3472_s21 + $0x68] sm:$0xff] %vm450_vm0, %v2086_v2  ;;  %v1985_v6 = vadd.f32 %v3464_v11, %v1984_v3  ;;  %v1986_v55 = vpop.f32.mrb[125].mxu0 }
 0x48f   : > { %v2087_v8 = vmax.f32 %v1985_v6, 0.0 }
 0x490   : > { %v1989_v7 = vpop.f32.mrb[126].mxu0 }
 0x491   : > { %2119 = vst.msk [vmem:[%s3472_s21 + $0x70] sm:$0xff] %vm450_vm0, %v2087_v8  ;;  %v1990_v9 = vadd.f32 %v3464_v11, %v1989_v7  ;;  %v1991_v10 = vpop.f32.mrb[127].mxu0 }
 0x493   : > { %v2088_v12 = vmax.f32 %v1990_v9, 0.0 }
 0x494   : > { %v1994_v13 = vpop.f32.mrb[128].mxu0 }
 0x495   : > { %2120 = vst.msk [vmem:[%s3472_s21 + $0x78] sm:$0xff] %vm450_vm0, %v2088_v12  ;;  %v1995_v14 = vadd.f32 %v3464_v11, %v1994_v13  ;;  %v1996_v4 = vpop.f32.mrb[129].mxu0 }
 0x497   : > { %v2089_v5 = vmax.f32 %v1995_v14, 0.0 }
 0x498   : > { %v1999_v52 = vpop.f32.mrb[130].mxu0 }
 0x499   : > { %2121 = vst.msk [vmem:[%s3472_s21 + $0x80] sm:$0xff] %vm450_vm0, %v2089_v5  ;;  %v2000_v50 = vadd.f32 %v3464_v11, %v1999_v52  ;;  %v2001_v54 = vpop.f32.mrb[131].mxu0 }
 0x49b   : > { %v2090_v15 = vmax.f32 %v2000_v50, 0.0 }
 0x49c   : > { %v2004_v16 = vpop.f32.mrb[132].mxu0 }
 0x49d   : > { %2122 = vst.msk [vmem:[%s3472_s21 + $0x88] sm:$0xff] %vm450_vm0, %v2090_v15  ;;  %v2005_v17 = vadd.f32 %v3464_v11, %v2004_v16  ;;  %v2006_v18 = vpop.f32.mrb[133].mxu0 }
 0x49f   : > { %v2091_v19 = vmax.f32 %v2005_v17, 0.0 }
 0x4a0   : > { %v2009_v20 = vpop.f32.mrb[134].mxu0 }
 0x4a1   : > { %2123 = vst.msk [vmem:[%s3472_s21 + $0x90] sm:$0xff] %vm450_vm0, %v2091_v19  ;;  %v2010_v21 = vadd.f32 %v3464_v11, %v2009_v20  ;;  %v2011_v22 = vpop.f32.mrb[135].mxu0 }
 0x4a3   : > { %v2092_v23 = vmax.f32 %v2010_v21, 0.0 }
 0x4a4   : > { %v2014_v24 = vpop.f32.mrb[136].mxu0 }
 0x4a5   : > { %2124 = vst.msk [vmem:[%s3472_s21 + $0x98] sm:$0xff] %vm450_vm0, %v2092_v23  ;;  %v2015_v25 = vadd.f32 %v3464_v11, %v2014_v24  ;;  %v2016_v27 = vpop.f32.mrb[137].mxu0 }
 0x4a7   : > { %v2093_v28 = vmax.f32 %v2015_v25, 0.0 }
 0x4a8   : > { %v2019_v29 = vpop.f32.mrb[138].mxu0 }
 0x4a9   : > { %2125 = vst.msk [vmem:[%s3472_s21 + $0xa0] sm:$0xff] %vm450_vm0, %v2093_v28  ;;  %v2020_v30 = vadd.f32 %v3464_v11, %v2019_v29  ;;  %v2021_v31 = vpop.f32.mrb[139].mxu0 }
 0x4ab   : > { %v2094_v32 = vmax.f32 %v2020_v30, 0.0 }
 0x4ac   : > { %v2024_v33 = vpop.f32.mrb[140].mxu0 }
 0x4ad   : > { %2126 = vst.msk [vmem:[%s3472_s21 + $0xa8] sm:$0xff] %vm450_vm0, %v2094_v32  ;;  %v2025_v34 = vadd.f32 %v3464_v11, %v2024_v33  ;;  %v2026_v35 = vpop.f32.mrb[141].mxu0 }
 0x4af   : > { %v2095_v56 = vmax.f32 %v2025_v34, 0.0 }
 0x4b0   : > { %v2029_v36 = vpop.f32.mrb[142].mxu0 }
 0x4b1   : > { %2127 = vst.msk [vmem:[%s3472_s21 + $0xb0] sm:$0xff] %vm450_vm0, %v2095_v56  ;;  %v2030_v37 = vadd.f32 %v3464_v11, %v2029_v36  ;;  %v2031_v38 = vpop.f32.mrb[143].mxu0 }
 0x4b3   : > { %v2096_v44 = vmax.f32 %v2030_v37, 0.0 }
 0x4b4   : > { %v2034_v39 = vpop.f32.mrb[144].mxu0 }
 0x4b5   : > { %2128 = vst.msk [vmem:[%s3472_s21 + $0xb8] sm:$0xff] %vm450_vm0, %v2096_v44  ;;  %v2035_v40 = vadd.f32 %v3464_v11, %v2034_v39  ;;  %v2036_v41 = vpop.f32.mrb[145].mxu0 }
 0x4b7   : > { %v2097_v42 = vmax.f32 %v2035_v40, 0.0 }
 0x4b8   : > { %v2039_v26 = vpop.f32.mrb[146].mxu0 }
 0x4b9   : > { %2129 = vst.msk [vmem:[%s3472_s21 + $0xc0] sm:$0xff] %vm450_vm0, %v2097_v42  ;;  %v2040_v43 = vadd.f32 %v3464_v11, %v2039_v26  ;;  %v2041_v45 = vpop.f32.mrb[147].mxu0 }
 0x4bb   : > { %v2098_v46 = vmax.f32 %v2040_v43, 0.0 }
 0x4bc   : > { %v2044_v47 = vpop.f32.mrb[148].mxu0 }
 0x4bd   : > { %2130 = vst.msk [vmem:[%s3472_s21 + $0xc8] sm:$0xff] %vm450_vm0, %v2098_v46  ;;  %v2045_v48 = vadd.f32 %v3464_v11, %v2044_v47  ;;  %v2046_v49 = vpop.f32.mrb[149].mxu0 }
 0x4bf   : > { %v2099_v51 = vmax.f32 %v2045_v48, 0.0 }
 0x4c0   : > { %v2049_v53 = vpop.f32.mrb[150].mxu0 }
 0x4c1   : > { %2131 = vst.msk [vmem:[%s3472_s21 + $0xd0] sm:$0xff] %vm450_vm0, %v2099_v51  ;;  %v2050_v57 = vadd.f32 %v3464_v11, %v2049_v53  ;;  %v2051_v58 = vpop.f32.mrb[151].mxu0 }
 0x4c3   : > { %v2100_v59 = vmax.f32 %v2050_v57, 0.0 }
 0x4c4   : > { %v2054_v60 = vpop.f32.mrb[152].mxu0 }
 0x4c5   : > { %2132 = vst.msk [vmem:[%s3472_s21 + $0xd8] sm:$0xff] %vm450_vm0, %v2100_v59  ;;  %v2055_v61 = vadd.f32 %v3464_v11, %v2054_v60  ;;  %v2056_v62 = vpop.f32.mrb[153].mxu0 }
 0x4c7   : > { %v2101_v63 = vmax.f32 %v2055_v61, 0.0 }
 0x4c8   : > { %v2059_v0 = vpop.f32.mrb[154].mxu0 }
 0x4c9   : > { %2133 = vst.msk [vmem:[%s3472_s21 + $0xe0] sm:$0xff] %vm450_vm0, %v2101_v63  ;;  %v2060_v1 = vadd.f32 %v3464_v11, %v2059_v0  ;;  %v2061_v2 = vpop.f32.mrb[155].mxu0 }
 0x4cb   : > { %v2102_v3 = vmax.f32 %v2060_v1, 0.0 }
 0x4cc   : > { %v2064_v6 = vpop.f32.mrb[128].mxu1 }
 0x4cd   : > { %2134 = vst.msk [vmem:[%s3472_s21 + $0xe8] sm:$0xff] %vm450_vm0, %v2102_v3  ;;  %v2065_v55 = vadd.f32 %v3464_v11, %v2064_v6  ;;  %v2066_v8 = vpop.f32.mrb[129].mxu1 }
 0x4cf   : > { %v2103_v7 = vmax.f32 %v2065_v55, 0.0 }
 0x4d0   : > { %v2069_v9 = vpop.f32.mrb[130].mxu1 }
 0x4d1   : > { %2135 = vst.msk [vmem:[%s3472_s21 + $0xf0] sm:$0xff] %vm450_vm0, %v2103_v7  ;;  %v2070_v10 = vadd.f32 %v3464_v11, %v2069_v9  ;;  %v2071_v12 = vpop.f32.mrb[131].mxu1 }
 0x4d3   : > { %v2104_v13 = vmax.f32 %v2070_v10, 0.0 }
 0x4d5   : > { %2136 = vst.msk [vmem:[%s3472_s21 + $0xf8] sm:$0xff] %vm450_vm0, %v2104_v13 }
 0x4d6 PF: > { %s21_s17 = sadd.s32 1, %s2591_s17  }
 0x4d7   : > { %p18_p4 = scmp.ge.s32.totalorder %s21_s17, 4  }
 0x4d9   :  { %20 = sbr.rel (!%p18_p4) target bundleno = 1 (0x1), region = 94 }

</bundles_post_ra>
